<compile_context>
chip_gen: v6e
topology: v6e:2x2x1
jax: 0.10.0
libtpu: 0.0.40
codegen_flags: <defaults>
</compile_context>

<pallas_src>
import functools

import jax
import jax.numpy as jnp
import numpy as np
from jax import lax
from jax.experimental import pallas as pl
from jax.experimental.pallas import tpu as pltpu


# ----------------------------------------------------------------------------
# Fused kernel: one grid step == TB batch elements flattened to a [TB*S, E] slab.
# ----------------------------------------------------------------------------
def fused_encoder_layer_kernel(x_ref, wq_ref, wk_ref, wvo_ref, bq_ref, bk_ref, bvo_ref, bo_ref,
                               w1_ref, w2_ref, out_ref, *attn_refs,
                               nhead, seq_len, batch_tile):
    cdt = x_ref.dtype                        # MXU operand dtype (f32 or bf16); accumulation is f32
    H, S, TB = nhead, seq_len, batch_tile
    x = x_ref[...]                           # [TB*S, E]

    y_parts = [None] * TB                    # per-batch f32 [S, E]: sum_h P_h (x W_vo,h + b_vo,h)
    attn_parts = [None] * TB                 # per-batch f32 [S, S]: sum_h softmax_h (exact recip)

    for h in range(H):
        # Per-head projections on the whole slab. Weights arrive pre-split per head from the
        # wrapper -> no non-128-aligned lane slicing of a fused QKV buffer in-kernel.
        qh = (jnp.dot(x, wq_ref[h], preferred_element_type=jnp.float32) + bq_ref[h]).astype(cdt)
        kh = (jnp.dot(x, wk_ref[h], preferred_element_type=jnp.float32) + bk_ref[h]).astype(cdt)
        # out_proj folded into the value path (W_vo,h): no [S, Dh] head outputs, no concat.
        voh = (jnp.dot(x, wvo_ref[h], preferred_element_type=jnp.float32) + bvo_ref[h]).astype(cdt)

        for b in range(TB):                  # static unroll; row slices are sublane-aligned
            r0, r1 = b * S, (b + 1) * S
            # q @ k^T expressed directly as a dot_general contraction (no transpose op)
            s = lax.dot_general(qh[r0:r1], kh[r0:r1], (((1,), (1,)), ((), ())),
                                preferred_element_type=jnp.float32)          # [S, S] f32
            m = jnp.max(s, axis=-1, keepdims=True)
            p = jnp.exp(s - m)
            denom = jnp.sum(p, axis=-1, keepdims=True)
            if attn_refs:
                # exact reciprocal for the *returned* attention weights (rows sum to 1)
                pa = p / denom
                attn_parts[b] = pa if attn_parts[b] is None else attn_parts[b] + pa
            # EUP approximate reciprocal on the value path only (off the VALU critical path)
            pv = (p * pl.reciprocal(denom, approx=True)).astype(cdt)
            yb = jnp.dot(pv, voh[r0:r1], preferred_element_type=jnp.float32)  # [S, E] f32
            y_parts[b] = yb if y_parts[b] is None else y_parts[b] + yb

    # attention-block output: one slab-wide bias broadcast (not per batch row / per head)
    y = jnp.concatenate(y_parts, axis=0) + bo_ref[...]                       # [TB*S, E] f32

    # FFN (bias-free) + residual + LayerNorm (fresh nn.LayerNorm each forward -> identity affine)
    hdn = jnp.maximum(jnp.dot(y.astype(cdt), w1_ref[...], preferred_element_type=jnp.float32), 0.0)
    f = jnp.dot(hdn.astype(cdt), w2_ref[...], preferred_element_type=jnp.float32)
    z = f + y
    mu = jnp.mean(z, axis=-1, keepdims=True)
    var = jnp.mean((z - mu) * (z - mu), axis=-1, keepdims=True)
    out_ref[...] = ((z - mu) * lax.rsqrt(var + 1e-5)).astype(out_ref.dtype)

    if attn_refs:
        attn_refs[0][...] = (jnp.concatenate(attn_parts, axis=0) * (1.0 / H)).astype(attn_refs[0].dtype)


# ----------------------------------------------------------------------------
# Wrapper
# ----------------------------------------------------------------------------
def transformer_encoder_layer(x, params, nhead, *, compute_dtype=jnp.float32,
                              batch_tile=None, need_weights=True):
    """x: [S, B, E]. Returns (enc_outputs [S, B, E], attn [B, S, S] or None)."""
    S, B, E = x.shape
    H = nhead
    Dh = E // H
    FF = params["ffn_w1"].shape[0]
    out_dt = x.dtype
    scale = 1.0 / float(np.sqrt(Dh))
    prec = lax.Precision.HIGHEST

    # Batch tile: pack several batch elements per grid step (amortizes per-step overhead,
    # enlarges DMAs). Largest divisor of B up to 8; with B=2 the whole batch is one step.
    if batch_tile is None:
        batch_tile = max(d for d in range(1, min(B, 8) + 1) if B % d == 0)
    assert B % batch_tile == 0, "batch_tile must divide batch"
    TB = batch_tile
    steps = B // TB
    NB = TB * S

    wi, bi = params["in_proj_w"], params["in_proj_b"]        # [3E, E], [3E]
    wo, bo = params["out_proj_w"], params["out_proj_b"]      # [E, E], [E]

    # One-time per-head weight prep: no in-kernel .T or lane slicing feeds the MXU.
    wq = wi[:E].reshape(H, Dh, E)                            # W_q,h  [Dh, E]
    wk = wi[E:2 * E].reshape(H, Dh, E)
    wv = wi[2 * E:].reshape(H, Dh, E)
    wo_h = wo.reshape(E, H, Dh).transpose(1, 0, 2)           # W_o,h = W_o[:, h*Dh:(h+1)*Dh]  [H, E, Dh]

    wq_t = (jnp.transpose(wq, (0, 2, 1)) * scale).astype(compute_dtype)   # [H, E, Dh], scale folded
    wk_t = jnp.transpose(wk, (0, 2, 1)).astype(compute_dtype)             # [H, E, Dh]
    bq_s = (bi[:E].reshape(H, 1, Dh) * scale).astype(jnp.float32)
    bk_f = bi[E:2 * E].reshape(H, 1, Dh).astype(jnp.float32)
    # Fold out_proj into the value path:  W_vo,h = W_v,h^T W_o,h^T ,  b_vo,h = W_o,h b_v,h
    w_vo = jnp.einsum("hde,hfd->hef", wv, wo_h, precision=prec).astype(compute_dtype)   # [H, E, E]
    b_vo = jnp.einsum("hfd,hd->hf", wo_h, bi[2 * E:].reshape(H, Dh),
                      precision=prec).reshape(H, 1, E).astype(jnp.float32)
    bo_r = bo.reshape(1, E).astype(jnp.float32)
    w1_t = params["ffn_w1"].T.astype(compute_dtype)           # [E, FF]
    w2_t = params["ffn_w2"].T.astype(compute_dtype)           # [FF, E]

    # [S,B,E] -> dense [B*S, E] row slab; the (optional) bf16 cast fuses into the same HBM pass.
    xb = jnp.transpose(x, (1, 0, 2)).reshape(B * S, E).astype(compute_dtype)

    kernel = functools.partial(fused_encoder_layer_kernel, nhead=H, seq_len=S, batch_tile=TB)

    enc_spec = pl.BlockSpec((NB, E), lambda i: (i, 0))
    if need_weights:
        out_shape = (jax.ShapeDtypeStruct((B * S, E), out_dt),
                     jax.ShapeDtypeStruct((B * S, S), jnp.float32))
        out_specs = (enc_spec, pl.BlockSpec((NB, S), lambda i: (i, 0)))
    else:
        out_shape = jax.ShapeDtypeStruct((B * S, E), out_dt)
        out_specs = enc_spec

    const3 = lambda i: (0, 0, 0)
    const2 = lambda i: (0, 0)
    res = pl.pallas_call(
        kernel,
        out_shape=out_shape,
        grid=(steps,),
        in_specs=[
            pl.BlockSpec((NB, E), lambda i: (i, 0)),     # activation slab (pipelined over batch tiles)
            pl.BlockSpec((H, E, Dh), const3),            # weights: constant index_map -> DMA'd once,
            pl.BlockSpec((H, E, Dh), const3),            #   stay resident across the grid
            pl.BlockSpec((H, E, E), const3),
            pl.BlockSpec((H, 1, Dh), const3),
            pl.BlockSpec((H, 1, Dh), const3),
            pl.BlockSpec((H, 1, E), const3),
            pl.BlockSpec((1, E), const2),
            pl.BlockSpec((E, FF), const2),
            pl.BlockSpec((FF, E), const2),
        ],
        out_specs=out_specs,
        compiler_params=pltpu.CompilerParams(
            dimension_semantics=("parallel",),           # independent batch tiles (megacore on v7x)
            vmem_limit_bytes=32 * 1024 * 1024,           # explicit budget, safe on v5e/v6e/v7x
        ),
    )(xb, wq_t, wk_t, w_vo, bq_s, bk_f, b_vo, bo_r, w1_t, w2_t)

    if need_weights:
        enc_flat, attn_flat = res
        attn = attn_flat.reshape(B, S, S)                # contiguous -> free reshape
    else:
        enc_flat, attn = res, None
    enc_outputs = jnp.transpose(enc_flat.reshape(B, S, E), (1, 0, 2))   # back to [S, B, E]
    return enc_outputs, attn


# ----------------------------------------------------------------------------
# Pure-JAX reference (HIGHEST-precision matmuls, exact softmax, f32 throughout)
# ----------------------------------------------------------------------------
def reference(x, params, nhead):
    S, B, E = x.shape
    H, Dh = nhead, E // nhead
    prec = lax.Precision.HIGHEST
    qkv = jnp.dot(x.reshape(S * B, E), params["in_proj_w"].T, precision=prec) + params["in_proj_b"]
    qkv = qkv.reshape(S, B, 3, H, Dh)
    q, k, v = (jnp.transpose(qkv[:, :, i], (1, 2, 0, 3)) for i in range(3))
    s = jnp.einsum("bhqd,bhkd->bhqk", q, k, precision=prec) / np.sqrt(Dh)
    p = jax.nn.softmax(s, axis=-1)
    o = jnp.einsum("bhqk,bhkd->bhqd", p, v, precision=prec)
    o = jnp.transpose(o, (2, 0, 1, 3)).reshape(S * B, E)
    y = jnp.dot(o, params["out_proj_w"].T, precision=prec) + params["out_proj_b"]
    f = jnp.dot(jnp.maximum(jnp.dot(y, params["ffn_w1"].T, precision=prec), 0.0),
                params["ffn_w2"].T, precision=prec)
    z = f + y
    mu = jnp.mean(z, axis=-1, keepdims=True)
    var = jnp.mean((z - mu) ** 2, axis=-1, keepdims=True)
    out = (z - mu) / jnp.sqrt(var + 1e-5)
    return out.reshape(S, B, E), jnp.mean(p, axis=1)


if __name__ == "__main__":
    # small shapes: seq=8, batch=2, d_model=32, nhead=4, d_ff(nhid)=64
    S, B, E, H, FF = 8, 2, 32, 4, 64

    key = jax.random.PRNGKey(0)
    ks = jax.random.split(key, 7)
    params = {
        "in_proj_w":  (jax.random.normal(ks[0], (3 * E, E), jnp.float32) * (1.0 / np.sqrt(E))),
        "in_proj_b":  jnp.zeros((3 * E,), jnp.float32),
        "out_proj_w": (jax.random.normal(ks[1], (E, E), jnp.float32) * (1.0 / np.sqrt(E))),
        "out_proj_b": jnp.zeros((E,), jnp.float32),
        "ffn_w1":     (jax.random.normal(ks[2], (FF, E), jnp.float32) * (1.0 / np.sqrt(E))),
        "ffn_w2":     (jax.random.normal(ks[3], (E, FF), jnp.float32) * (1.0 / np.sqrt(FF))),
    }
    x = jax.random.normal(ks[4], (S, B, E), jnp.float32)   # [seq, batch, d_model]

    ref_out, ref_attn = reference(x, params, H)

    # f32 path. attn uses an exact reciprocal -> tight tolerance; enc keeps the EUP approximate
    # reciprocal on the value path, hence the looser tolerance.
    fwd = jax.jit(functools.partial(transformer_encoder_layer, nhead=H))
    enc_out, attn = fwd(x, params)
    jax.block_until_ready((enc_out, attn))
    np.testing.assert_allclose(np.asarray(attn), np.asarray(ref_attn), rtol=1e-2, atol=1e-2)
    np.testing.assert_allclose(np.asarray(enc_out), np.asarray(ref_out), rtol=2e-2, atol=2e-2)

    # bf16-operand / f32-accumulate path (recommended default on v6e/v7x) — checked against the
    # f32 reference with operand-rounding-level tolerances.
    fwd_bf16 = jax.jit(functools.partial(transformer_encoder_layer, nhead=H,
                                         compute_dtype=jnp.bfloat16))
    enc_bf16, attn_bf16 = fwd_bf16(x, params)
    jax.block_until_ready((enc_bf16, attn_bf16))
    np.testing.assert_allclose(np.asarray(attn_bf16), np.asarray(ref_attn), rtol=5e-2, atol=5e-2)
    np.testing.assert_allclose(np.asarray(enc_bf16), np.asarray(ref_out), rtol=1e-1, atol=1e-1)

    # need_weights=False path: skips the per-batch S^2 attention-weight compute and HBM store.
    fwd_nw = jax.jit(functools.partial(transformer_encoder_layer, nhead=H, need_weights=False))
    enc_nw, attn_none = fwd_nw(x, params)
    jax.block_until_ready(enc_nw)
    assert attn_none is None
    np.testing.assert_allclose(np.asarray(enc_nw), np.asarray(enc_out), rtol=1e-6, atol=1e-6)

    print("KERNEL_OK")
</pallas_src>

<mosaic_0001>
module attributes {stable_mosaic.version = 11 : i64} {
  func.func @fused_encoder_layer_kernel(%arg0: i32, %arg1: memref<16x32xf32, #tpu.memory_space<vmem>>, %arg2: memref<4x32x8xf32, #tpu.memory_space<vmem>>, %arg3: memref<4x32x8xf32, #tpu.memory_space<vmem>>, %arg4: memref<4x32x32xf32, #tpu.memory_space<vmem>>, %arg5: memref<4x1x8xf32, #tpu.memory_space<vmem>>, %arg6: memref<4x1x8xf32, #tpu.memory_space<vmem>>, %arg7: memref<4x1x32xf32, #tpu.memory_space<vmem>>, %arg8: memref<1x32xf32, #tpu.memory_space<vmem>>, %arg9: memref<32x64xf32, #tpu.memory_space<vmem>>, %arg10: memref<64x32xf32, #tpu.memory_space<vmem>>, %arg11: memref<16x32xf32, #tpu.memory_space<vmem>>, %arg12: memref<16x8xf32, #tpu.memory_space<vmem>>) attributes {dimension_semantics = [#tpu.dimension_semantics<parallel>], iteration_bounds = array<i64: 1>, scalar_prefetch = 0 : i64, scratch_operands = 0 : i64, tpu.core_type = #tpu.core_type<tc>, window_params = [{transform_indices = @transform_0, window_bounds = array<i64: 16, 32>}, {pipeline_mode = #tpu.pipeline_mode<synchronous>, transform_indices = @transform_1, window_bounds = array<i64: 4, 32, 8>}, {pipeline_mode = #tpu.pipeline_mode<synchronous>, transform_indices = @transform_2, window_bounds = array<i64: 4, 32, 8>}, {pipeline_mode = #tpu.pipeline_mode<synchronous>, transform_indices = @transform_3, window_bounds = array<i64: 4, 32, 32>}, {pipeline_mode = #tpu.pipeline_mode<synchronous>, transform_indices = @transform_4, window_bounds = array<i64: 4, 1, 8>}, {pipeline_mode = #tpu.pipeline_mode<synchronous>, transform_indices = @transform_5, window_bounds = array<i64: 4, 1, 8>}, {pipeline_mode = #tpu.pipeline_mode<synchronous>, transform_indices = @transform_6, window_bounds = array<i64: 4, 1, 32>}, {pipeline_mode = #tpu.pipeline_mode<synchronous>, transform_indices = @transform_7, window_bounds = array<i64: 1, 32>}, {pipeline_mode = #tpu.pipeline_mode<synchronous>, transform_indices = @transform_8, window_bounds = array<i64: 32, 64>}, {pipeline_mode = #tpu.pipeline_mode<synchronous>, transform_indices = @transform_9, window_bounds = array<i64: 64, 32>}, {transform_indices = @transform_10, window_bounds = array<i64: 16, 32>}, {transform_indices = @transform_11, window_bounds = array<i64: 16, 8>}]} {
    %c0 = arith.constant 0 : index
    %c0_0 = arith.constant 0 : index
    %0 = vector.load %arg1[%c0, %c0_0] : memref<16x32xf32, #tpu.memory_space<vmem>>, vector<16x32xf32>
    %c0_1 = arith.constant 0 : index
    %c0_2 = arith.constant 0 : index
    %c0_3 = arith.constant 0 : index
    %1 = vector.load %arg2[%c0_1, %c0_2, %c0_3] : memref<4x32x8xf32, #tpu.memory_space<vmem>>, vector<1x32x8xf32>
    %2 = vector.shape_cast %1 : vector<1x32x8xf32> to vector<32x8xf32>
    %cst = arith.constant dense<0.000000e+00> : vector<16x8xf32>
    %3 = tpu.matmul %0, %2, %cst {dimension_numbers = #tpu.dot_dimension_numbers<[1], [0], [0], [1], [0, 0, 1, 1], [], []>} : vector<16x32xf32>, vector<32x8xf32>, vector<16x8xf32> -> vector<16x8xf32>
    %c0_4 = arith.constant 0 : index
    %c0_5 = arith.constant 0 : index
    %c0_6 = arith.constant 0 : index
    %4 = vector.load %arg5[%c0_4, %c0_5, %c0_6] : memref<4x1x8xf32, #tpu.memory_space<vmem>>, vector<1x1x8xf32>
    %5 = vector.shape_cast %4 : vector<1x1x8xf32> to vector<1x8xf32>
    %6 = vector.broadcast %5 : vector<1x8xf32> to vector<16x8xf32>
    %7 = arith.addf %3, %6 : vector<16x8xf32>
    %c0_7 = arith.constant 0 : index
    %c0_8 = arith.constant 0 : index
    %c0_9 = arith.constant 0 : index
    %8 = vector.load %arg3[%c0_7, %c0_8, %c0_9] : memref<4x32x8xf32, #tpu.memory_space<vmem>>, vector<1x32x8xf32>
    %9 = vector.shape_cast %8 : vector<1x32x8xf32> to vector<32x8xf32>
    %cst_10 = arith.constant dense<0.000000e+00> : vector<16x8xf32>
    %10 = tpu.matmul %0, %9, %cst_10 {dimension_numbers = #tpu.dot_dimension_numbers<[1], [0], [0], [1], [0, 0, 1, 1], [], []>} : vector<16x32xf32>, vector<32x8xf32>, vector<16x8xf32> -> vector<16x8xf32>
    %c0_11 = arith.constant 0 : index
    %c0_12 = arith.constant 0 : index
    %c0_13 = arith.constant 0 : index
    %11 = vector.load %arg6[%c0_11, %c0_12, %c0_13] : memref<4x1x8xf32, #tpu.memory_space<vmem>>, vector<1x1x8xf32>
    %12 = vector.shape_cast %11 : vector<1x1x8xf32> to vector<1x8xf32>
    %13 = vector.broadcast %12 : vector<1x8xf32> to vector<16x8xf32>
    %14 = arith.addf %10, %13 : vector<16x8xf32>
    %c0_14 = arith.constant 0 : index
    %c0_15 = arith.constant 0 : index
    %c0_16 = arith.constant 0 : index
    %15 = vector.load %arg4[%c0_14, %c0_15, %c0_16] : memref<4x32x32xf32, #tpu.memory_space<vmem>>, vector<1x32x32xf32>
    %16 = vector.shape_cast %15 : vector<1x32x32xf32> to vector<32x32xf32>
    %cst_17 = arith.constant dense<0.000000e+00> : vector<16x32xf32>
    %17 = tpu.matmul %0, %16, %cst_17 {dimension_numbers = #tpu.dot_dimension_numbers<[1], [0], [0], [1], [0, 0, 1, 1], [], []>} : vector<16x32xf32>, vector<32x32xf32>, vector<16x32xf32> -> vector<16x32xf32>
    %c0_18 = arith.constant 0 : index
    %c0_19 = arith.constant 0 : index
    %c0_20 = arith.constant 0 : index
    %18 = vector.load %arg7[%c0_18, %c0_19, %c0_20] : memref<4x1x32xf32, #tpu.memory_space<vmem>>, vector<1x1x32xf32>
    %19 = vector.shape_cast %18 : vector<1x1x32xf32> to vector<1x32xf32>
    %20 = vector.broadcast %19 : vector<1x32xf32> to vector<16x32xf32>
    %21 = arith.addf %17, %20 : vector<16x32xf32>
    %22 = vector.extract_strided_slice %7 {offsets = [0, 0], sizes = [8, 8], strides = [1, 1]} : vector<16x8xf32> to vector<8x8xf32>
    %23 = vector.extract_strided_slice %14 {offsets = [0, 0], sizes = [8, 8], strides = [1, 1]} : vector<16x8xf32> to vector<8x8xf32>
    %cst_21 = arith.constant dense<0.000000e+00> : vector<8x8xf32>
    %24 = tpu.matmul %22, %23, %cst_21 {dimension_numbers = #tpu.dot_dimension_numbers<[1], [1], [0], [0], [0, 0, 1, 0], [], []>} : vector<8x8xf32>, vector<8x8xf32>, vector<8x8xf32> -> vector<8x8xf32>
    %cst_22 = arith.constant dense<0xFF800000> : vector<8xf32>
    %25 = vector.multi_reduction <maximumf>, %24, %cst_22 [1] : vector<8x8xf32> to vector<8xf32>
    %26 = vector.shape_cast %25 : vector<8xf32> to vector<8x1xf32>
    %27 = vector.broadcast %26 : vector<8x1xf32> to vector<8x8xf32>
    %28 = arith.subf %24, %27 : vector<8x8xf32>
    %29 = math.exp %28 : vector<8x8xf32>
    %cst_23 = arith.constant dense<0.000000e+00> : vector<8xf32>
    %30 = vector.multi_reduction <add>, %29, %cst_23 [1] : vector<8x8xf32> to vector<8xf32>
    %31 = vector.shape_cast %30 : vector<8xf32> to vector<8x1xf32>
    %32 = vector.broadcast %31 : vector<8x1xf32> to vector<8x8xf32>
    %33 = arith.divf %29, %32 : vector<8x8xf32>
    %34 = tpu.reciprocal %31 {approx = true} : vector<8x1xf32> -> vector<8x1xf32>
    %35 = vector.broadcast %34 : vector<8x1xf32> to vector<8x8xf32>
    %36 = arith.mulf %29, %35 : vector<8x8xf32>
    %37 = vector.extract_strided_slice %21 {offsets = [0, 0], sizes = [8, 32], strides = [1, 1]} : vector<16x32xf32> to vector<8x32xf32>
    %cst_24 = arith.constant dense<0.000000e+00> : vector<8x32xf32>
    %38 = tpu.matmul %36, %37, %cst_24 {dimension_numbers = #tpu.dot_dimension_numbers<[1], [0], [0], [1], [0, 0, 1, 1], [], []>} : vector<8x8xf32>, vector<8x32xf32>, vector<8x32xf32> -> vector<8x32xf32>
    %39 = vector.extract_strided_slice %7 {offsets = [8, 0], sizes = [8, 8], strides = [1, 1]} : vector<16x8xf32> to vector<8x8xf32>
    %40 = vector.extract_strided_slice %14 {offsets = [8, 0], sizes = [8, 8], strides = [1, 1]} : vector<16x8xf32> to vector<8x8xf32>
    %cst_25 = arith.constant dense<0.000000e+00> : vector<8x8xf32>
    %41 = tpu.matmul %39, %40, %cst_25 {dimension_numbers = #tpu.dot_dimension_numbers<[1], [1], [0], [0], [0, 0, 1, 0], [], []>} : vector<8x8xf32>, vector<8x8xf32>, vector<8x8xf32> -> vector<8x8xf32>
    %cst_26 = arith.constant dense<0xFF800000> : vector<8xf32>
    %42 = vector.multi_reduction <maximumf>, %41, %cst_26 [1] : vector<8x8xf32> to vector<8xf32>
    %43 = vector.shape_cast %42 : vector<8xf32> to vector<8x1xf32>
    %44 = vector.broadcast %43 : vector<8x1xf32> to vector<8x8xf32>
    %45 = arith.subf %41, %44 : vector<8x8xf32>
    %46 = math.exp %45 : vector<8x8xf32>
    %cst_27 = arith.constant dense<0.000000e+00> : vector<8xf32>
    %47 = vector.multi_reduction <add>, %46, %cst_27 [1] : vector<8x8xf32> to vector<8xf32>
    %48 = vector.shape_cast %47 : vector<8xf32> to vector<8x1xf32>
    %49 = vector.broadcast %48 : vector<8x1xf32> to vector<8x8xf32>
    %50 = arith.divf %46, %49 : vector<8x8xf32>
    %51 = tpu.reciprocal %48 {approx = true} : vector<8x1xf32> -> vector<8x1xf32>
    %52 = vector.broadcast %51 : vector<8x1xf32> to vector<8x8xf32>
    %53 = arith.mulf %46, %52 : vector<8x8xf32>
    %54 = vector.extract_strided_slice %21 {offsets = [8, 0], sizes = [8, 32], strides = [1, 1]} : vector<16x32xf32> to vector<8x32xf32>
    %cst_28 = arith.constant dense<0.000000e+00> : vector<8x32xf32>
    %55 = tpu.matmul %53, %54, %cst_28 {dimension_numbers = #tpu.dot_dimension_numbers<[1], [0], [0], [1], [0, 0, 1, 1], [], []>} : vector<8x8xf32>, vector<8x32xf32>, vector<8x32xf32> -> vector<8x32xf32>
    %c1 = arith.constant 1 : index
    %c0_29 = arith.constant 0 : index
    %c0_30 = arith.constant 0 : index
    %56 = vector.load %arg2[%c1, %c0_29, %c0_30] : memref<4x32x8xf32, #tpu.memory_space<vmem>>, vector<1x32x8xf32>
    %57 = vector.shape_cast %56 : vector<1x32x8xf32> to vector<32x8xf32>
    %cst_31 = arith.constant dense<0.000000e+00> : vector<16x8xf32>
    %58 = tpu.matmul %0, %57, %cst_31 {dimension_numbers = #tpu.dot_dimension_numbers<[1], [0], [0], [1], [0, 0, 1, 1], [], []>} : vector<16x32xf32>, vector<32x8xf32>, vector<16x8xf32> -> vector<16x8xf32>
    %c1_32 = arith.constant 1 : index
    %c0_33 = arith.constant 0 : index
    %c0_34 = arith.constant 0 : index
    %59 = vector.load %arg5[%c1_32, %c0_33, %c0_34] : memref<4x1x8xf32, #tpu.memory_space<vmem>>, vector<1x1x8xf32>
    %60 = vector.shape_cast %59 : vector<1x1x8xf32> to vector<1x8xf32>
    %61 = vector.broadcast %60 : vector<1x8xf32> to vector<16x8xf32>
    %62 = arith.addf %58, %61 : vector<16x8xf32>
    %c1_35 = arith.constant 1 : index
    %c0_36 = arith.constant 0 : index
    %c0_37 = arith.constant 0 : index
    %63 = vector.load %arg3[%c1_35, %c0_36, %c0_37] : memref<4x32x8xf32, #tpu.memory_space<vmem>>, vector<1x32x8xf32>
    %64 = vector.shape_cast %63 : vector<1x32x8xf32> to vector<32x8xf32>
    %cst_38 = arith.constant dense<0.000000e+00> : vector<16x8xf32>
    %65 = tpu.matmul %0, %64, %cst_38 {dimension_numbers = #tpu.dot_dimension_numbers<[1], [0], [0], [1], [0, 0, 1, 1], [], []>} : vector<16x32xf32>, vector<32x8xf32>, vector<16x8xf32> -> vector<16x8xf32>
    %c1_39 = arith.constant 1 : index
    %c0_40 = arith.constant 0 : index
    %c0_41 = arith.constant 0 : index
    %66 = vector.load %arg6[%c1_39, %c0_40, %c0_41] : memref<4x1x8xf32, #tpu.memory_space<vmem>>, vector<1x1x8xf32>
    %67 = vector.shape_cast %66 : vector<1x1x8xf32> to vector<1x8xf32>
    %68 = vector.broadcast %67 : vector<1x8xf32> to vector<16x8xf32>
    %69 = arith.addf %65, %68 : vector<16x8xf32>
    %c1_42 = arith.constant 1 : index
    %c0_43 = arith.constant 0 : index
    %c0_44 = arith.constant 0 : index
    %70 = vector.load %arg4[%c1_42, %c0_43, %c0_44] : memref<4x32x32xf32, #tpu.memory_space<vmem>>, vector<1x32x32xf32>
    %71 = vector.shape_cast %70 : vector<1x32x32xf32> to vector<32x32xf32>
    %cst_45 = arith.constant dense<0.000000e+00> : vector<16x32xf32>
    %72 = tpu.matmul %0, %71, %cst_45 {dimension_numbers = #tpu.dot_dimension_numbers<[1], [0], [0], [1], [0, 0, 1, 1], [], []>} : vector<16x32xf32>, vector<32x32xf32>, vector<16x32xf32> -> vector<16x32xf32>
    %c1_46 = arith.constant 1 : index
    %c0_47 = arith.constant 0 : index
    %c0_48 = arith.constant 0 : index
    %73 = vector.load %arg7[%c1_46, %c0_47, %c0_48] : memref<4x1x32xf32, #tpu.memory_space<vmem>>, vector<1x1x32xf32>
    %74 = vector.shape_cast %73 : vector<1x1x32xf32> to vector<1x32xf32>
    %75 = vector.broadcast %74 : vector<1x32xf32> to vector<16x32xf32>
    %76 = arith.addf %72, %75 : vector<16x32xf32>
    %77 = vector.extract_strided_slice %62 {offsets = [0, 0], sizes = [8, 8], strides = [1, 1]} : vector<16x8xf32> to vector<8x8xf32>
    %78 = vector.extract_strided_slice %69 {offsets = [0, 0], sizes = [8, 8], strides = [1, 1]} : vector<16x8xf32> to vector<8x8xf32>
    %cst_49 = arith.constant dense<0.000000e+00> : vector<8x8xf32>
    %79 = tpu.matmul %77, %78, %cst_49 {dimension_numbers = #tpu.dot_dimension_numbers<[1], [1], [0], [0], [0, 0, 1, 0], [], []>} : vector<8x8xf32>, vector<8x8xf32>, vector<8x8xf32> -> vector<8x8xf32>
    %cst_50 = arith.constant dense<0xFF800000> : vector<8xf32>
    %80 = vector.multi_reduction <maximumf>, %79, %cst_50 [1] : vector<8x8xf32> to vector<8xf32>
    %81 = vector.shape_cast %80 : vector<8xf32> to vector<8x1xf32>
    %82 = vector.broadcast %81 : vector<8x1xf32> to vector<8x8xf32>
    %83 = arith.subf %79, %82 : vector<8x8xf32>
    %84 = math.exp %83 : vector<8x8xf32>
    %cst_51 = arith.constant dense<0.000000e+00> : vector<8xf32>
    %85 = vector.multi_reduction <add>, %84, %cst_51 [1] : vector<8x8xf32> to vector<8xf32>
    %86 = vector.shape_cast %85 : vector<8xf32> to vector<8x1xf32>
    %87 = vector.broadcast %86 : vector<8x1xf32> to vector<8x8xf32>
    %88 = arith.divf %84, %87 : vector<8x8xf32>
    %89 = arith.addf %33, %88 : vector<8x8xf32>
    %90 = tpu.reciprocal %86 {approx = true} : vector<8x1xf32> -> vector<8x1xf32>
    %91 = vector.broadcast %90 : vector<8x1xf32> to vector<8x8xf32>
    %92 = arith.mulf %84, %91 : vector<8x8xf32>
    %93 = vector.extract_strided_slice %76 {offsets = [0, 0], sizes = [8, 32], strides = [1, 1]} : vector<16x32xf32> to vector<8x32xf32>
    %cst_52 = arith.constant dense<0.000000e+00> : vector<8x32xf32>
    %94 = tpu.matmul %92, %93, %cst_52 {dimension_numbers = #tpu.dot_dimension_numbers<[1], [0], [0], [1], [0, 0, 1, 1], [], []>} : vector<8x8xf32>, vector<8x32xf32>, vector<8x32xf32> -> vector<8x32xf32>
    %95 = arith.addf %38, %94 : vector<8x32xf32>
    %96 = vector.extract_strided_slice %62 {offsets = [8, 0], sizes = [8, 8], strides = [1, 1]} : vector<16x8xf32> to vector<8x8xf32>
    %97 = vector.extract_strided_slice %69 {offsets = [8, 0], sizes = [8, 8], strides = [1, 1]} : vector<16x8xf32> to vector<8x8xf32>
    %cst_53 = arith.constant dense<0.000000e+00> : vector<8x8xf32>
    %98 = tpu.matmul %96, %97, %cst_53 {dimension_numbers = #tpu.dot_dimension_numbers<[1], [1], [0], [0], [0, 0, 1, 0], [], []>} : vector<8x8xf32>, vector<8x8xf32>, vector<8x8xf32> -> vector<8x8xf32>
    %cst_54 = arith.constant dense<0xFF800000> : vector<8xf32>
    %99 = vector.multi_reduction <maximumf>, %98, %cst_54 [1] : vector<8x8xf32> to vector<8xf32>
    %100 = vector.shape_cast %99 : vector<8xf32> to vector<8x1xf32>
    %101 = vector.broadcast %100 : vector<8x1xf32> to vector<8x8xf32>
    %102 = arith.subf %98, %101 : vector<8x8xf32>
    %103 = math.exp %102 : vector<8x8xf32>
    %cst_55 = arith.constant dense<0.000000e+00> : vector<8xf32>
    %104 = vector.multi_reduction <add>, %103, %cst_55 [1] : vector<8x8xf32> to vector<8xf32>
    %105 = vector.shape_cast %104 : vector<8xf32> to vector<8x1xf32>
    %106 = vector.broadcast %105 : vector<8x1xf32> to vector<8x8xf32>
    %107 = arith.divf %103, %106 : vector<8x8xf32>
    %108 = arith.addf %50, %107 : vector<8x8xf32>
    %109 = tpu.reciprocal %105 {approx = true} : vector<8x1xf32> -> vector<8x1xf32>
    %110 = vector.broadcast %109 : vector<8x1xf32> to vector<8x8xf32>
    %111 = arith.mulf %103, %110 : vector<8x8xf32>
    %112 = vector.extract_strided_slice %76 {offsets = [8, 0], sizes = [8, 32], strides = [1, 1]} : vector<16x32xf32> to vector<8x32xf32>
    %cst_56 = arith.constant dense<0.000000e+00> : vector<8x32xf32>
    %113 = tpu.matmul %111, %112, %cst_56 {dimension_numbers = #tpu.dot_dimension_numbers<[1], [0], [0], [1], [0, 0, 1, 1], [], []>} : vector<8x8xf32>, vector<8x32xf32>, vector<8x32xf32> -> vector<8x32xf32>
    %114 = arith.addf %55, %113 : vector<8x32xf32>
    %c2 = arith.constant 2 : index
    %c0_57 = arith.constant 0 : index
    %c0_58 = arith.constant 0 : index
    %115 = vector.load %arg2[%c2, %c0_57, %c0_58] : memref<4x32x8xf32, #tpu.memory_space<vmem>>, vector<1x32x8xf32>
    %116 = vector.shape_cast %115 : vector<1x32x8xf32> to vector<32x8xf32>
    %cst_59 = arith.constant dense<0.000000e+00> : vector<16x8xf32>
    %117 = tpu.matmul %0, %116, %cst_59 {dimension_numbers = #tpu.dot_dimension_numbers<[1], [0], [0], [1], [0, 0, 1, 1], [], []>} : vector<16x32xf32>, vector<32x8xf32>, vector<16x8xf32> -> vector<16x8xf32>
    %c2_60 = arith.constant 2 : index
    %c0_61 = arith.constant 0 : index
    %c0_62 = arith.constant 0 : index
    %118 = vector.load %arg5[%c2_60, %c0_61, %c0_62] : memref<4x1x8xf32, #tpu.memory_space<vmem>>, vector<1x1x8xf32>
    %119 = vector.shape_cast %118 : vector<1x1x8xf32> to vector<1x8xf32>
    %120 = vector.broadcast %119 : vector<1x8xf32> to vector<16x8xf32>
    %121 = arith.addf %117, %120 : vector<16x8xf32>
    %c2_63 = arith.constant 2 : index
    %c0_64 = arith.constant 0 : index
    %c0_65 = arith.constant 0 : index
    %122 = vector.load %arg3[%c2_63, %c0_64, %c0_65] : memref<4x32x8xf32, #tpu.memory_space<vmem>>, vector<1x32x8xf32>
    %123 = vector.shape_cast %122 : vector<1x32x8xf32> to vector<32x8xf32>
    %cst_66 = arith.constant dense<0.000000e+00> : vector<16x8xf32>
    %124 = tpu.matmul %0, %123, %cst_66 {dimension_numbers = #tpu.dot_dimension_numbers<[1], [0], [0], [1], [0, 0, 1, 1], [], []>} : vector<16x32xf32>, vector<32x8xf32>, vector<16x8xf32> -> vector<16x8xf32>
    %c2_67 = arith.constant 2 : index
    %c0_68 = arith.constant 0 : index
    %c0_69 = arith.constant 0 : index
    %125 = vector.load %arg6[%c2_67, %c0_68, %c0_69] : memref<4x1x8xf32, #tpu.memory_space<vmem>>, vector<1x1x8xf32>
    %126 = vector.shape_cast %125 : vector<1x1x8xf32> to vector<1x8xf32>
    %127 = vector.broadcast %126 : vector<1x8xf32> to vector<16x8xf32>
    %128 = arith.addf %124, %127 : vector<16x8xf32>
    %c2_70 = arith.constant 2 : index
    %c0_71 = arith.constant 0 : index
    %c0_72 = arith.constant 0 : index
    %129 = vector.load %arg4[%c2_70, %c0_71, %c0_72] : memref<4x32x32xf32, #tpu.memory_space<vmem>>, vector<1x32x32xf32>
    %130 = vector.shape_cast %129 : vector<1x32x32xf32> to vector<32x32xf32>
    %cst_73 = arith.constant dense<0.000000e+00> : vector<16x32xf32>
    %131 = tpu.matmul %0, %130, %cst_73 {dimension_numbers = #tpu.dot_dimension_numbers<[1], [0], [0], [1], [0, 0, 1, 1], [], []>} : vector<16x32xf32>, vector<32x32xf32>, vector<16x32xf32> -> vector<16x32xf32>
    %c2_74 = arith.constant 2 : index
    %c0_75 = arith.constant 0 : index
    %c0_76 = arith.constant 0 : index
    %132 = vector.load %arg7[%c2_74, %c0_75, %c0_76] : memref<4x1x32xf32, #tpu.memory_space<vmem>>, vector<1x1x32xf32>
    %133 = vector.shape_cast %132 : vector<1x1x32xf32> to vector<1x32xf32>
    %134 = vector.broadcast %133 : vector<1x32xf32> to vector<16x32xf32>
    %135 = arith.addf %131, %134 : vector<16x32xf32>
    %136 = vector.extract_strided_slice %121 {offsets = [0, 0], sizes = [8, 8], strides = [1, 1]} : vector<16x8xf32> to vector<8x8xf32>
    %137 = vector.extract_strided_slice %128 {offsets = [0, 0], sizes = [8, 8], strides = [1, 1]} : vector<16x8xf32> to vector<8x8xf32>
    %cst_77 = arith.constant dense<0.000000e+00> : vector<8x8xf32>
    %138 = tpu.matmul %136, %137, %cst_77 {dimension_numbers = #tpu.dot_dimension_numbers<[1], [1], [0], [0], [0, 0, 1, 0], [], []>} : vector<8x8xf32>, vector<8x8xf32>, vector<8x8xf32> -> vector<8x8xf32>
    %cst_78 = arith.constant dense<0xFF800000> : vector<8xf32>
    %139 = vector.multi_reduction <maximumf>, %138, %cst_78 [1] : vector<8x8xf32> to vector<8xf32>
    %140 = vector.shape_cast %139 : vector<8xf32> to vector<8x1xf32>
    %141 = vector.broadcast %140 : vector<8x1xf32> to vector<8x8xf32>
    %142 = arith.subf %138, %141 : vector<8x8xf32>
    %143 = math.exp %142 : vector<8x8xf32>
    %cst_79 = arith.constant dense<0.000000e+00> : vector<8xf32>
    %144 = vector.multi_reduction <add>, %143, %cst_79 [1] : vector<8x8xf32> to vector<8xf32>
    %145 = vector.shape_cast %144 : vector<8xf32> to vector<8x1xf32>
    %146 = vector.broadcast %145 : vector<8x1xf32> to vector<8x8xf32>
    %147 = arith.divf %143, %146 : vector<8x8xf32>
    %148 = arith.addf %89, %147 : vector<8x8xf32>
    %149 = tpu.reciprocal %145 {approx = true} : vector<8x1xf32> -> vector<8x1xf32>
    %150 = vector.broadcast %149 : vector<8x1xf32> to vector<8x8xf32>
    %151 = arith.mulf %143, %150 : vector<8x8xf32>
    %152 = vector.extract_strided_slice %135 {offsets = [0, 0], sizes = [8, 32], strides = [1, 1]} : vector<16x32xf32> to vector<8x32xf32>
    %cst_80 = arith.constant dense<0.000000e+00> : vector<8x32xf32>
    %153 = tpu.matmul %151, %152, %cst_80 {dimension_numbers = #tpu.dot_dimension_numbers<[1], [0], [0], [1], [0, 0, 1, 1], [], []>} : vector<8x8xf32>, vector<8x32xf32>, vector<8x32xf32> -> vector<8x32xf32>
    %154 = arith.addf %95, %153 : vector<8x32xf32>
    %155 = vector.extract_strided_slice %121 {offsets = [8, 0], sizes = [8, 8], strides = [1, 1]} : vector<16x8xf32> to vector<8x8xf32>
    %156 = vector.extract_strided_slice %128 {offsets = [8, 0], sizes = [8, 8], strides = [1, 1]} : vector<16x8xf32> to vector<8x8xf32>
    %cst_81 = arith.constant dense<0.000000e+00> : vector<8x8xf32>
    %157 = tpu.matmul %155, %156, %cst_81 {dimension_numbers = #tpu.dot_dimension_numbers<[1], [1], [0], [0], [0, 0, 1, 0], [], []>} : vector<8x8xf32>, vector<8x8xf32>, vector<8x8xf32> -> vector<8x8xf32>
    %cst_82 = arith.constant dense<0xFF800000> : vector<8xf32>
    %158 = vector.multi_reduction <maximumf>, %157, %cst_82 [1] : vector<8x8xf32> to vector<8xf32>
    %159 = vector.shape_cast %158 : vector<8xf32> to vector<8x1xf32>
    %160 = vector.broadcast %159 : vector<8x1xf32> to vector<8x8xf32>
    %161 = arith.subf %157, %160 : vector<8x8xf32>
    %162 = math.exp %161 : vector<8x8xf32>
    %cst_83 = arith.constant dense<0.000000e+00> : vector<8xf32>
    %163 = vector.multi_reduction <add>, %162, %cst_83 [1] : vector<8x8xf32> to vector<8xf32>
    %164 = vector.shape_cast %163 : vector<8xf32> to vector<8x1xf32>
    %165 = vector.broadcast %164 : vector<8x1xf32> to vector<8x8xf32>
    %166 = arith.divf %162, %165 : vector<8x8xf32>
    %167 = arith.addf %108, %166 : vector<8x8xf32>
    %168 = tpu.reciprocal %164 {approx = true} : vector<8x1xf32> -> vector<8x1xf32>
    %169 = vector.broadcast %168 : vector<8x1xf32> to vector<8x8xf32>
    %170 = arith.mulf %162, %169 : vector<8x8xf32>
    %171 = vector.extract_strided_slice %135 {offsets = [8, 0], sizes = [8, 32], strides = [1, 1]} : vector<16x32xf32> to vector<8x32xf32>
    %cst_84 = arith.constant dense<0.000000e+00> : vector<8x32xf32>
    %172 = tpu.matmul %170, %171, %cst_84 {dimension_numbers = #tpu.dot_dimension_numbers<[1], [0], [0], [1], [0, 0, 1, 1], [], []>} : vector<8x8xf32>, vector<8x32xf32>, vector<8x32xf32> -> vector<8x32xf32>
    %173 = arith.addf %114, %172 : vector<8x32xf32>
    %c3 = arith.constant 3 : index
    %c0_85 = arith.constant 0 : index
    %c0_86 = arith.constant 0 : index
    %174 = vector.load %arg2[%c3, %c0_85, %c0_86] : memref<4x32x8xf32, #tpu.memory_space<vmem>>, vector<1x32x8xf32>
    %175 = vector.shape_cast %174 : vector<1x32x8xf32> to vector<32x8xf32>
    %cst_87 = arith.constant dense<0.000000e+00> : vector<16x8xf32>
    %176 = tpu.matmul %0, %175, %cst_87 {dimension_numbers = #tpu.dot_dimension_numbers<[1], [0], [0], [1], [0, 0, 1, 1], [], []>} : vector<16x32xf32>, vector<32x8xf32>, vector<16x8xf32> -> vector<16x8xf32>
    %c3_88 = arith.constant 3 : index
    %c0_89 = arith.constant 0 : index
    %c0_90 = arith.constant 0 : index
    %177 = vector.load %arg5[%c3_88, %c0_89, %c0_90] : memref<4x1x8xf32, #tpu.memory_space<vmem>>, vector<1x1x8xf32>
    %178 = vector.shape_cast %177 : vector<1x1x8xf32> to vector<1x8xf32>
    %179 = vector.broadcast %178 : vector<1x8xf32> to vector<16x8xf32>
    %180 = arith.addf %176, %179 : vector<16x8xf32>
    %c3_91 = arith.constant 3 : index
    %c0_92 = arith.constant 0 : index
    %c0_93 = arith.constant 0 : index
    %181 = vector.load %arg3[%c3_91, %c0_92, %c0_93] : memref<4x32x8xf32, #tpu.memory_space<vmem>>, vector<1x32x8xf32>
    %182 = vector.shape_cast %181 : vector<1x32x8xf32> to vector<32x8xf32>
    %cst_94 = arith.constant dense<0.000000e+00> : vector<16x8xf32>
    %183 = tpu.matmul %0, %182, %cst_94 {dimension_numbers = #tpu.dot_dimension_numbers<[1], [0], [0], [1], [0, 0, 1, 1], [], []>} : vector<16x32xf32>, vector<32x8xf32>, vector<16x8xf32> -> vector<16x8xf32>
    %c3_95 = arith.constant 3 : index
    %c0_96 = arith.constant 0 : index
    %c0_97 = arith.constant 0 : index
    %184 = vector.load %arg6[%c3_95, %c0_96, %c0_97] : memref<4x1x8xf32, #tpu.memory_space<vmem>>, vector<1x1x8xf32>
    %185 = vector.shape_cast %184 : vector<1x1x8xf32> to vector<1x8xf32>
    %186 = vector.broadcast %185 : vector<1x8xf32> to vector<16x8xf32>
    %187 = arith.addf %183, %186 : vector<16x8xf32>
    %c3_98 = arith.constant 3 : index
    %c0_99 = arith.constant 0 : index
    %c0_100 = arith.constant 0 : index
    %188 = vector.load %arg4[%c3_98, %c0_99, %c0_100] : memref<4x32x32xf32, #tpu.memory_space<vmem>>, vector<1x32x32xf32>
    %189 = vector.shape_cast %188 : vector<1x32x32xf32> to vector<32x32xf32>
    %cst_101 = arith.constant dense<0.000000e+00> : vector<16x32xf32>
    %190 = tpu.matmul %0, %189, %cst_101 {dimension_numbers = #tpu.dot_dimension_numbers<[1], [0], [0], [1], [0, 0, 1, 1], [], []>} : vector<16x32xf32>, vector<32x32xf32>, vector<16x32xf32> -> vector<16x32xf32>
    %c3_102 = arith.constant 3 : index
    %c0_103 = arith.constant 0 : index
    %c0_104 = arith.constant 0 : index
    %191 = vector.load %arg7[%c3_102, %c0_103, %c0_104] : memref<4x1x32xf32, #tpu.memory_space<vmem>>, vector<1x1x32xf32>
    %192 = vector.shape_cast %191 : vector<1x1x32xf32> to vector<1x32xf32>
    %193 = vector.broadcast %192 : vector<1x32xf32> to vector<16x32xf32>
    %194 = arith.addf %190, %193 : vector<16x32xf32>
    %195 = vector.extract_strided_slice %180 {offsets = [0, 0], sizes = [8, 8], strides = [1, 1]} : vector<16x8xf32> to vector<8x8xf32>
    %196 = vector.extract_strided_slice %187 {offsets = [0, 0], sizes = [8, 8], strides = [1, 1]} : vector<16x8xf32> to vector<8x8xf32>
    %cst_105 = arith.constant dense<0.000000e+00> : vector<8x8xf32>
    %197 = tpu.matmul %195, %196, %cst_105 {dimension_numbers = #tpu.dot_dimension_numbers<[1], [1], [0], [0], [0, 0, 1, 0], [], []>} : vector<8x8xf32>, vector<8x8xf32>, vector<8x8xf32> -> vector<8x8xf32>
    %cst_106 = arith.constant dense<0xFF800000> : vector<8xf32>
    %198 = vector.multi_reduction <maximumf>, %197, %cst_106 [1] : vector<8x8xf32> to vector<8xf32>
    %199 = vector.shape_cast %198 : vector<8xf32> to vector<8x1xf32>
    %200 = vector.broadcast %199 : vector<8x1xf32> to vector<8x8xf32>
    %201 = arith.subf %197, %200 : vector<8x8xf32>
    %202 = math.exp %201 : vector<8x8xf32>
    %cst_107 = arith.constant dense<0.000000e+00> : vector<8xf32>
    %203 = vector.multi_reduction <add>, %202, %cst_107 [1] : vector<8x8xf32> to vector<8xf32>
    %204 = vector.shape_cast %203 : vector<8xf32> to vector<8x1xf32>
    %205 = vector.broadcast %204 : vector<8x1xf32> to vector<8x8xf32>
    %206 = arith.divf %202, %205 : vector<8x8xf32>
    %207 = arith.addf %148, %206 : vector<8x8xf32>
    %208 = tpu.reciprocal %204 {approx = true} : vector<8x1xf32> -> vector<8x1xf32>
    %209 = vector.broadcast %208 : vector<8x1xf32> to vector<8x8xf32>
    %210 = arith.mulf %202, %209 : vector<8x8xf32>
    %211 = vector.extract_strided_slice %194 {offsets = [0, 0], sizes = [8, 32], strides = [1, 1]} : vector<16x32xf32> to vector<8x32xf32>
    %cst_108 = arith.constant dense<0.000000e+00> : vector<8x32xf32>
    %212 = tpu.matmul %210, %211, %cst_108 {dimension_numbers = #tpu.dot_dimension_numbers<[1], [0], [0], [1], [0, 0, 1, 1], [], []>} : vector<8x8xf32>, vector<8x32xf32>, vector<8x32xf32> -> vector<8x32xf32>
    %213 = arith.addf %154, %212 : vector<8x32xf32>
    %214 = vector.extract_strided_slice %180 {offsets = [8, 0], sizes = [8, 8], strides = [1, 1]} : vector<16x8xf32> to vector<8x8xf32>
    %215 = vector.extract_strided_slice %187 {offsets = [8, 0], sizes = [8, 8], strides = [1, 1]} : vector<16x8xf32> to vector<8x8xf32>
    %cst_109 = arith.constant dense<0.000000e+00> : vector<8x8xf32>
    %216 = tpu.matmul %214, %215, %cst_109 {dimension_numbers = #tpu.dot_dimension_numbers<[1], [1], [0], [0], [0, 0, 1, 0], [], []>} : vector<8x8xf32>, vector<8x8xf32>, vector<8x8xf32> -> vector<8x8xf32>
    %cst_110 = arith.constant dense<0xFF800000> : vector<8xf32>
    %217 = vector.multi_reduction <maximumf>, %216, %cst_110 [1] : vector<8x8xf32> to vector<8xf32>
    %218 = vector.shape_cast %217 : vector<8xf32> to vector<8x1xf32>
    %219 = vector.broadcast %218 : vector<8x1xf32> to vector<8x8xf32>
    %220 = arith.subf %216, %219 : vector<8x8xf32>
    %221 = math.exp %220 : vector<8x8xf32>
    %cst_111 = arith.constant dense<0.000000e+00> : vector<8xf32>
    %222 = vector.multi_reduction <add>, %221, %cst_111 [1] : vector<8x8xf32> to vector<8xf32>
    %223 = vector.shape_cast %222 : vector<8xf32> to vector<8x1xf32>
    %224 = vector.broadcast %223 : vector<8x1xf32> to vector<8x8xf32>
    %225 = arith.divf %221, %224 : vector<8x8xf32>
    %226 = arith.addf %167, %225 : vector<8x8xf32>
    %227 = tpu.reciprocal %223 {approx = true} : vector<8x1xf32> -> vector<8x1xf32>
    %228 = vector.broadcast %227 : vector<8x1xf32> to vector<8x8xf32>
    %229 = arith.mulf %221, %228 : vector<8x8xf32>
    %230 = vector.extract_strided_slice %194 {offsets = [8, 0], sizes = [8, 32], strides = [1, 1]} : vector<16x32xf32> to vector<8x32xf32>
    %cst_112 = arith.constant dense<0.000000e+00> : vector<8x32xf32>
    %231 = tpu.matmul %229, %230, %cst_112 {dimension_numbers = #tpu.dot_dimension_numbers<[1], [0], [0], [1], [0, 0, 1, 1], [], []>} : vector<8x8xf32>, vector<8x32xf32>, vector<8x32xf32> -> vector<8x32xf32>
    %232 = arith.addf %173, %231 : vector<8x32xf32>
    %233 = tpu.concatenate %213, %232 in 0 : vector<8x32xf32>, vector<8x32xf32> -> vector<16x32xf32>
    %c0_113 = arith.constant 0 : index
    %c0_114 = arith.constant 0 : index
    %234 = vector.load %arg8[%c0_113, %c0_114] : memref<1x32xf32, #tpu.memory_space<vmem>>, vector<1x32xf32>
    %235 = vector.broadcast %234 : vector<1x32xf32> to vector<16x32xf32>
    %236 = arith.addf %233, %235 : vector<16x32xf32>
    %c0_115 = arith.constant 0 : index
    %c0_116 = arith.constant 0 : index
    %237 = vector.load %arg9[%c0_115, %c0_116] : memref<32x64xf32, #tpu.memory_space<vmem>>, vector<32x64xf32>
    %cst_117 = arith.constant dense<0.000000e+00> : vector<16x64xf32>
    %238 = tpu.matmul %236, %237, %cst_117 {dimension_numbers = #tpu.dot_dimension_numbers<[1], [0], [0], [1], [0, 0, 1, 1], [], []>} : vector<16x32xf32>, vector<32x64xf32>, vector<16x64xf32> -> vector<16x64xf32>
    %cst_118 = arith.constant 0.000000e+00 : f32
    %239 = vector.broadcast %cst_118 : f32 to vector<16x64xf32>
    %240 = arith.maximumf %238, %239 : vector<16x64xf32>
    %c0_119 = arith.constant 0 : index
    %c0_120 = arith.constant 0 : index
    %241 = vector.load %arg10[%c0_119, %c0_120] : memref<64x32xf32, #tpu.memory_space<vmem>>, vector<64x32xf32>
    %cst_121 = arith.constant dense<0.000000e+00> : vector<16x32xf32>
    %242 = tpu.matmul %240, %241, %cst_121 {dimension_numbers = #tpu.dot_dimension_numbers<[1], [0], [0], [1], [0, 0, 1, 1], [], []>} : vector<16x64xf32>, vector<64x32xf32>, vector<16x32xf32> -> vector<16x32xf32>
    %243 = arith.addf %242, %236 : vector<16x32xf32>
    %cst_122 = arith.constant dense<0.000000e+00> : vector<16xf32>
    %244 = vector.multi_reduction <add>, %243, %cst_122 [1] : vector<16x32xf32> to vector<16xf32>
    %245 = vector.shape_cast %244 : vector<16xf32> to vector<16x1xf32>
    %cst_123 = arith.constant 3.200000e+01 : f32
    %246 = vector.broadcast %cst_123 : f32 to vector<16x1xf32>
    %247 = arith.divf %245, %246 : vector<16x1xf32>
    %248 = vector.broadcast %247 : vector<16x1xf32> to vector<16x32xf32>
    %249 = arith.subf %243, %248 : vector<16x32xf32>
    %250 = vector.broadcast %247 : vector<16x1xf32> to vector<16x32xf32>
    %251 = arith.subf %243, %250 : vector<16x32xf32>
    %252 = arith.mulf %249, %251 : vector<16x32xf32>
    %cst_124 = arith.constant dense<0.000000e+00> : vector<16xf32>
    %253 = vector.multi_reduction <add>, %252, %cst_124 [1] : vector<16x32xf32> to vector<16xf32>
    %254 = vector.shape_cast %253 : vector<16xf32> to vector<16x1xf32>
    %cst_125 = arith.constant 3.200000e+01 : f32
    %255 = vector.broadcast %cst_125 : f32 to vector<16x1xf32>
    %256 = arith.divf %254, %255 : vector<16x1xf32>
    %257 = vector.broadcast %247 : vector<16x1xf32> to vector<16x32xf32>
    %258 = arith.subf %243, %257 : vector<16x32xf32>
    %cst_126 = arith.constant 9.99999974E-6 : f32
    %259 = vector.broadcast %cst_126 : f32 to vector<16x1xf32>
    %260 = arith.addf %256, %259 : vector<16x1xf32>
    %261 = math.rsqrt %260 : vector<16x1xf32>
    %262 = vector.broadcast %261 : vector<16x1xf32> to vector<16x32xf32>
    %263 = arith.mulf %258, %262 : vector<16x32xf32>
    %c0_127 = arith.constant 0 : index
    %c0_128 = arith.constant 0 : index
    %264 = vector.load %arg11[%c0_127, %c0_128] : memref<16x32xf32, #tpu.memory_space<vmem>>, vector<16x32xf32>
    tpu.vector_store %arg11[%c0_127, %c0_128], %263 {strides = array<i32>} : memref<16x32xf32, #tpu.memory_space<vmem>>, vector<16x32xf32>,
    %265 = tpu.concatenate %207, %226 in 0 : vector<8x8xf32>, vector<8x8xf32> -> vector<16x8xf32>
    %cst_129 = arith.constant 2.500000e-01 : f32
    %266 = vector.broadcast %cst_129 : f32 to vector<16x8xf32>
    %267 = arith.mulf %265, %266 : vector<16x8xf32>
    %c0_130 = arith.constant 0 : index
    %c0_131 = arith.constant 0 : index
    %268 = vector.load %arg12[%c0_130, %c0_131] : memref<16x8xf32, #tpu.memory_space<vmem>>, vector<16x8xf32>
    tpu.vector_store %arg12[%c0_130, %c0_131], %267 {strides = array<i32>} : memref<16x8xf32, #tpu.memory_space<vmem>>, vector<16x8xf32>,
    return
  }
  func.func @transform_0(%arg0: i32) -> (i32, i32) {
    %c0_i32 = arith.constant 0 : i32
    %c0_i32_0 = arith.constant 0 : i32
    return %arg0, %c0_i32 : i32, i32
  }
  func.func @transform_1(%arg0: i32) -> (i32, i32, i32) {
    %c0_i32 = arith.constant 0 : i32
    %c0_i32_0 = arith.constant 0 : i32
    %c0_i32_1 = arith.constant 0 : i32
    %c0_i32_2 = arith.constant 0 : i32
    return %c0_i32, %c0_i32_0, %c0_i32_1 : i32, i32, i32
  }
  func.func @transform_2(%arg0: i32) -> (i32, i32, i32) {
    %c0_i32 = arith.constant 0 : i32
    %c0_i32_0 = arith.constant 0 : i32
    %c0_i32_1 = arith.constant 0 : i32
    %c0_i32_2 = arith.constant 0 : i32
    return %c0_i32, %c0_i32_0, %c0_i32_1 : i32, i32, i32
  }
  func.func @transform_3(%arg0: i32) -> (i32, i32, i32) {
    %c0_i32 = arith.constant 0 : i32
    %c0_i32_0 = arith.constant 0 : i32
    %c0_i32_1 = arith.constant 0 : i32
    %c0_i32_2 = arith.constant 0 : i32
    return %c0_i32, %c0_i32_0, %c0_i32_1 : i32, i32, i32
  }
  func.func @transform_4(%arg0: i32) -> (i32, i32, i32) {
    %c0_i32 = arith.constant 0 : i32
    %c0_i32_0 = arith.constant 0 : i32
    %c0_i32_1 = arith.constant 0 : i32
    %c0_i32_2 = arith.constant 0 : i32
    return %c0_i32, %c0_i32_0, %c0_i32_1 : i32, i32, i32
  }
  func.func @transform_5(%arg0: i32) -> (i32, i32, i32) {
    %c0_i32 = arith.constant 0 : i32
    %c0_i32_0 = arith.constant 0 : i32
    %c0_i32_1 = arith.constant 0 : i32
    %c0_i32_2 = arith.constant 0 : i32
    return %c0_i32, %c0_i32_0, %c0_i32_1 : i32, i32, i32
  }
  func.func @transform_6(%arg0: i32) -> (i32, i32, i32) {
    %c0_i32 = arith.constant 0 : i32
    %c0_i32_0 = arith.constant 0 : i32
    %c0_i32_1 = arith.constant 0 : i32
    %c0_i32_2 = arith.constant 0 : i32
    return %c0_i32, %c0_i32_0, %c0_i32_1 : i32, i32, i32
  }
  func.func @transform_7(%arg0: i32) -> (i32, i32) {
    %c0_i32 = arith.constant 0 : i32
    %c0_i32_0 = arith.constant 0 : i32
    %c0_i32_1 = arith.constant 0 : i32
    return %c0_i32, %c0_i32_0 : i32, i32
  }
  func.func @transform_8(%arg0: i32) -> (i32, i32) {
    %c0_i32 = arith.constant 0 : i32
    %c0_i32_0 = arith.constant 0 : i32
    %c0_i32_1 = arith.constant 0 : i32
    return %c0_i32, %c0_i32_0 : i32, i32
  }
  func.func @transform_9(%arg0: i32) -> (i32, i32) {
    %c0_i32 = arith.constant 0 : i32
    %c0_i32_0 = arith.constant 0 : i32
    %c0_i32_1 = arith.constant 0 : i32
    return %c0_i32, %c0_i32_0 : i32, i32
  }
  func.func @transform_10(%arg0: i32) -> (i32, i32) {
    %c0_i32 = arith.constant 0 : i32
    %c0_i32_0 = arith.constant 0 : i32
    return %arg0, %c0_i32 : i32, i32
  }
  func.func @transform_11(%arg0: i32) -> (i32, i32) {
    %c0_i32 = arith.constant 0 : i32
    %c0_i32_0 = arith.constant 0 : i32
    return %arg0, %c0_i32 : i32, i32
  }
}

</mosaic_0001>

<bundles_post_ra>
// kernel: transformer_encoder_layer.1
= control target key start
LH: loop header
LB: loop body
LE: loop exit
PB: predicated region body
PF: predicated region fallthrough
CT: control target
= control target key end

     0   :  { %vm51_vm0 = vcmask 261120   ;;  %s3674_s0 = inlined_call_operand.vmem [shape: f32[16,32], index: 0, kind: input, shape index: {}]   ;;  %s3675_s1 = inlined_call_operand.vmem [shape: f32[4,32,8], index: 1, kind: input, shape index: {}]   ;;  %s3676_s2 = inlined_call_operand.vmem [shape: f32[4,32,8], index: 2, kind: input, shape index: {}]   ;;  %s3677_s3 = inlined_call_operand.vmem [shape: f32[4,32,32], index: 3, kind: input, shape index: {}]   ;;  %s3678_s4 = inlined_call_operand.vmem [shape: f32[4,1,8], index: 4, kind: input, shape index: {}]   ;;  %s3679_s5 = inlined_call_operand.vmem [shape: f32[4,1,8], index: 5, kind: input, shape index: {}]   ;;  %s3680_s6 = inlined_call_operand.vmem [shape: f32[4,1,32], index: 6, kind: input, shape index: {}]   ;;  %s3681_s7 = inlined_call_operand.vmem [shape: f32[1,32], index: 7, kind: input, shape index: {}]   ;;  %s3682_s8 = inlined_call_operand.vmem [shape: f32[32,64], index: 8, kind: input, shape index: {}]   ;;  %s3683_s9 = inlined_call_operand.vmem [shape: f32[64,32], index: 9, kind: input, shape index: {}]   ;;  %s3684_s10 = inlined_call_operand.vmem [shape: f32[16,32], index: 10, kind: output, shape index: {0}]   ;;  %s3685_s11 = inlined_call_operand.hbm [shape: f32[16,8], index: 11, kind: output, shape index: {1}]  }
   0x1   :  { %v136_v0 = vld [vmem:[%s3676_s2 + $0x18] sm:$0xff]  ;;  %v135_v2 = vld [vmem:[%s3676_s2 + $0x10] sm:$0xff]  ;;  %v134_v4 = vld [vmem:[%s3676_s2 + $0x8] sm:$0xff] }
   0x2   :  { %v43_v1 = vld [vmem:[%s3675_s1 + $0x18] sm:$0xff]  ;;  %2884 = vmatprep.subr.mxu1 %v136_v0  ;;  %v42_v3 = vld [vmem:[%s3675_s1 + $0x10] sm:$0xff]  ;;  %v41_v5 = vld [vmem:[%s3675_s1 + $0x8] sm:$0xff] }
   0x3   :  { %2873 = vmatprep.subr.mxu0 %v43_v1  ;;  %2885 = vmatpush3.msra.mxu1 %v136_v0  ;;  %v133_v6 = vld [vmem:[%s3676_s2] sm:$0xff] }
   0x4   :  { %2874 = vmatpush3.msra.mxu0 %v43_v1  ;;  %2886 = vmatprep.subr.mxu1 %v135_v2  ;;  %v3267_v7 = vld [vmem:[%s3674_s0] sm:$0xff] }
   0x5   :  { %2875 = vmatprep.subr.mxu0 %v42_v3  ;;  %2887 = vmatpush3.msra.mxu1 %v135_v2 }
   0x6   :  { %2876 = vmatpush3.msra.mxu0 %v42_v3 }
   0x7   :  { %17 = vsyncpa [#allocation3], 0  ;;  %2888 = vmatprep.subr.mxu1 %v134_v4  ;;  %2877 = vmatprep.subr.mxu0 %v41_v5  ;;  %v40_v8 = vld [vmem:[%s3675_s1] sm:$0xff]  ;;  %v3275_v9 = vld [vmem:[%s3674_s0 + $0x8] sm:$0xff]  ;;  %v3178_v14 = vmov 0.0   ;;  %vm3179_vm1 = vmmov 0  }
   0x8   :  { %2889 = vmatpush3.msra.mxu1 %v134_v4  ;;  %2878 = vmatpush3.msra.mxu0 %v41_v5  ;;  %v222_v10 = vld [vmem:[%s3677_s3 + $0x18] sm:$0xff]  ;;  %v221_v11 = vld [vmem:[%s3677_s3 + $0x10] sm:$0xff]  ;;  %v220_v12 = vld [vmem:[%s3677_s3 + $0x8] sm:$0xff]  ;;  %vm305_vm2 = vcmask 64512   ;;  %vm2508_vm3 = vcmask 523264  }
   0x9   :  { %2890 = vmatprep.subr.mxu1 %v133_v6  ;;  %2892 = vmatprep.mubr.msk.f32.mxu1 %vm51_vm0, %v3267_v7  ;;  %v219_v13 = vld [vmem:[%s3677_s3] sm:$0xff]  ;;  %v2667_v19 = vld [vmem:[%s3676_s2 + $0x38] sm:$0xff]  ;;  %v2666_v27 = vld [vmem:[%s3676_s2 + $0x30] sm:$0xff] }
   0xa   :  { %2891 = vmatpush3.msra.mxu1 %v133_v6  ;;  %2879 = vmatprep.subr.mxu0 %v40_v8  ;;  %v2646_v15 = vld [vmem:[%s3679_s5] ss:$0 sm:$0xff]  ;;  %v2659_v24 = vld [vmem:[%s3675_s1 + $0x38] sm:$0xff]  ;;  %v2658_v28 = vld [vmem:[%s3675_s1 + $0x30] sm:$0xff] }
   0xb   :  { %2893 = vmatmul.mubr.msk.f32.vlgmr.msra.gmra.mxu1 %vm51_vm0, %v3275_v9  ;;  %2880 = vmatpush3.msra.mxu0 %v40_v8  ;;  %v2643_v17 = vld [vmem:[%s3678_s4] ss:$0 sm:$0xff]  ;;  %v2665_v29 = vld [vmem:[%s3676_s2 + $0x28] sm:$0xff]  ;;  %v2675_v33 = vld [vmem:[%s3677_s3 + $0x38] sm:$0xff] }
   0xc   :  { %2881 = vmatprep.mubr.msk.f32.mxu0 %vm51_vm0, %v3267_v7  ;;  %2895 = vmatprep.subr.mxu0 %v222_v10  ;;  %v2657_v30 = vld [vmem:[%s3675_s1 + $0x28] sm:$0xff]  ;;  %v2664_v31 = vld [vmem:[%s3676_s2 + $0x20] sm:$0xff]  ;;  %v2674_v34 = vld [vmem:[%s3677_s3 + $0x30] sm:$0xff] }
   0xd   :  { %2882 = vmatmul.mubr.msk.f32.vlgmr.msra.gmra.mxu0 %vm51_vm0, %v3275_v9  ;;  %2911 = vmatprep.subr.mxu1 %v3178_v14  ;;  %v2656_v32 = vld [vmem:[%s3675_s1 + $0x20] sm:$0xff]  ;;  %v2673_v35 = vld [vmem:[%s3677_s3 + $0x28] sm:$0xff] }
   0xe   :  { %2896 = vmatpush3.msra.mxu0 %v222_v10  ;;  %2903 = vmatprep.mubr.msk.f32.mxu0 %vm51_vm0, %v3267_v7  ;;  %v2649_v36 = vld [vmem:[%s3680_s6] ss:$0 sm:$0xff]  ;;  %v2669_v47 = vld [vmem:[%s3679_s5 + $0x1] ss:$0 sm:$0xff] }
   0xf   :  { %2897 = vmatprep.subr.mxu0 %v221_v11  ;;  %2913 = vmatprep.mubr.msk.f32.mxu1 %vm3179_vm1, %v3178_v14  ;;  %v2672_v39 = vld [vmem:[%s3677_s3 + $0x20] sm:$0xff] }
  0x10   :  { %2898 = vmatpush3.msra.mxu0 %v221_v11  ;;  %v2661_v50 = vld [vmem:[%s3678_s4 + $0x1] ss:$0 sm:$0xff] }
  0x11   :  { %2899 = vmatprep.subr.mxu0 %v220_v12  ;;  %v2677_v4 = vld [vmem:[%s3680_s6 + $0x1] ss:$0 sm:$0xff] }
  0x12   :  { %2900 = vmatpush3.msra.mxu0 %v220_v12 }
  0x13   :  { %2901 = vmatprep.subr.mxu0 %v219_v13 }
  0x14   :  { %2902 = vmatpush3.msra.mxu0 %v219_v13 }
  0x15   :  { %2904 = vmatmul.mubr.msk.f32.vlgmr.msra.gmra.mxu0 %vm51_vm0, %v3275_v9  ;;  %2906 = vmatprep.subr.mxu0 %v3178_v14 }
  0x16   :  { %2908 = vmatprep.mubr.msk.f32.mxu0 %vm3179_vm1, %v3178_v14 }
  0xcb   :  { %v2894_v16 = vpop.f32.mrf.mxu1 }
  0xcc   :  { %v216_v18 = vadd.f32 %v2894_v16, %v2646_v15 }
  0xcd   :  { %v2883_v20 = vpop.f32.mrf.mxu0  ;;  %v210_v21 = vpop.f32.mrf.mxu1 }
  0xce   :  { %v130_v22 = vadd.f32 %v2883_v20, %v2643_v17  ;;  %v211_v23 = vadd.f32 %v2646_v15, %v210_v21  ;;  %2912 = vmatpush3.xpose.msk.msra.mxu1 %vm305_vm2, %v216_v18 }
  0xcf   :  { %v124_v25 = vpop.f32.mrf.mxu0  ;;  %2927 = vmatprep.subr.mxu1 %v2667_v19 }
  0xd0   :  { %v125_v26 = vadd.f32 %v2643_v17, %v124_v25  ;;  %2907 = vmatpush3.xpose.msk.msra.mxu0 %vm305_vm2, %v211_v23 }
  0xd1   :  { %2914 = vmatmul.mubr.msk.f32.vlgmr.msra.gmra.mxu1 %vm305_vm2, %v130_v22  ;;  %2916 = vmatprep.subr.mxu0 %v2659_v24 }
  0xd2   :  { %2928 = vmatpush3.msra.mxu1 %v2667_v19  ;;  %2935 = vmatprep.mubr.msk.f32.mxu1 %vm51_vm0, %v3267_v7 }
  0xd3   :  { %2909 = vmatmul.mubr.msk.f32.vlgmr.msra.gmra.mxu0 %vm305_vm2, %v125_v26  ;;  %2929 = vmatprep.subr.mxu1 %v2666_v27 }
  0xd4   :  { %2917 = vmatpush3.msra.mxu0 %v2659_v24  ;;  %2930 = vmatpush3.msra.mxu1 %v2666_v27 }
  0xd5   :  { %2918 = vmatprep.subr.mxu0 %v2658_v28  ;;  %2931 = vmatprep.subr.mxu1 %v2665_v29  ;;  %v2905_v37 = vpop.f32.mrf.mxu0 }
  0xd6   :  { %2919 = vmatpush3.msra.mxu0 %v2658_v28  ;;  %2932 = vmatpush3.msra.mxu1 %v2665_v29  ;;  %v3366_v38 = vadd.f32 %v2905_v37, %v2649_v36 }
  0xd7   :  { %2920 = vmatprep.subr.mxu0 %v2657_v30  ;;  %2933 = vmatprep.subr.mxu1 %v2664_v31  ;;  %v296_v40 = vpop.f32.mrf.mxu0 }
  0xd8   :  { %2921 = vmatpush3.msra.mxu0 %v2657_v30  ;;  %2934 = vmatpush3.msra.mxu1 %v2664_v31  ;;  %v297_v41 = vadd.f32 %v2649_v36, %v296_v40 }
  0xd9   :  { %2922 = vmatprep.subr.mxu0 %v2656_v32  ;;  %2936 = vmatmul.mubr.msk.f32.vlgmr.msra.gmra.mxu1 %vm51_vm0, %v3275_v9 }
  0xda   :  { %2923 = vmatpush3.msra.mxu0 %v2656_v32  ;;  %2924 = vmatprep.mubr.msk.f32.mxu0 %vm51_vm0, %v3267_v7 }
  0xdb   :  { %2925 = vmatmul.mubr.msk.f32.vlgmr.msra.gmra.mxu0 %vm51_vm0, %v3275_v9  ;;  %2938 = vmatprep.subr.mxu0 %v2675_v33 }
  0xdc   :  { %2939 = vmatpush3.msra.mxu0 %v2675_v33  ;;  %2946 = vmatprep.mubr.msk.f32.mxu0 %vm51_vm0, %v3267_v7 }
  0xdd   :  { %2940 = vmatprep.subr.mxu0 %v2674_v34  ;;  %2949 = vmatprep.subr.mxu1 %v3178_v14 }
  0xde   :  { %2941 = vmatpush3.msra.mxu0 %v2674_v34  ;;  %2951 = vmatprep.mubr.msk.f32.mxu1 %vm3179_vm1, %v3178_v14 }
  0xdf   :  { %2942 = vmatprep.subr.mxu0 %v2673_v35 }
  0xe0   :  { %2943 = vmatpush3.msra.mxu0 %v2673_v35 }
  0xe1   :  { %2944 = vmatprep.subr.mxu0 %v2672_v39 }
  0xe2   :  { %2945 = vmatpush3.msra.mxu0 %v2672_v39 }
  0xe3   :  { %2959 = vmatprep.subr.mxu0 %v3178_v14  ;;  %2947 = vmatmul.mubr.msk.f32.vlgmr.msra.gmra.mxu0 %vm51_vm0, %v3275_v9 }
  0xe4   :  { %2960 = vmatpush3.msra.mxu0 %v297_v41  ;;  %2961 = vmatprep.mubr.msk.f32.mxu0 %vm3179_vm1, %v3178_v14  ;;  %v2699_v41 = vld [vmem:[%s3676_s2 + $0x58] sm:$0xff] }
  0xe5   :  { %2969 = vmatprep.subr.mxu0 %v3178_v14 }
 0x191   :  { %v3377_v42 = vpop.f32.mrf.mxu1 }
 0x192   :  { %v471_v48 = vsel %vm305_vm2, %v3377_v42, -inf }
 0x193   :  { %v378_v43 = vpop.f32.mrf.mxu0  ;;  %v2915_v44 = vpop.f32.mrf.mxu1 }
 0x194   :  { %v382_v45 = vsel %vm305_vm2, %v378_v43, -inf  ;;  %v2697_v44 = vld [vmem:[%s3676_s2 + $0x48] sm:$0xff] }
 0x195   :  { %383 = vmax.xlane.f32.xlu1 %v382_v45  ;;  %v2910_v46 = vpop.f32.mrf.mxu0  ;;  %v2696_v45 = vld [vmem:[%s3676_s2 + $0x40] sm:$0xff] }
 0x199   :  { %v2937_v49 = vpop.f32.mrf.mxu1  ;;  %472 = vmax.xlane.f32.xlu1 %v471_v48 }
 0x19a   :  { %v657_v51 = vadd.f32 %v2937_v49, %v2669_v47  ;;  %v2690_v49 = vld [vmem:[%s3675_s1 + $0x50] sm:$0xff] }
 0x19b   :  { %v2926_v52 = vpop.f32.mrf.mxu0  ;;  %v651_v53 = vpop.f32.mrf.mxu1 }
 0x19c   :  { %v569_v54 = vadd.f32 %v2926_v52, %v2661_v50  ;;  %v652_v55 = vadd.f32 %v2669_v47, %v651_v53  ;;  %v2707_v52 = vld [vmem:[%s3677_s3 + $0x58] sm:$0xff] }
 0x19d   :  { %v563_v56 = vpop.f32.mrf.mxu0 }
 0x19e   :  { %v564_v57 = vadd.f32 %v2661_v50, %v563_v56  ;;  %2950 = vmatpush3.xpose.msk.msra.mxu1 %vm305_vm2, %v652_v55  ;;  %v2689_v50 = vld [vmem:[%s3675_s1 + $0x48] sm:$0xff]  ;;  %v2706_v55 = vld [vmem:[%s3677_s3 + $0x50] sm:$0xff]  ;;  %v2701_v56 = vld [vmem:[%s3679_s5 + $0x2] ss:$0 sm:$0xff] }
 0x19f   :  { %2954 = vmatprep.subr.mxu1 %v3178_v14 }
 0x1a1   :  { %2952 = vmatmul.mubr.msk.f32.vlgmr.msra.gmra.mxu1 %vm305_vm2, %v564_v57  ;;  %v2705_v57 = vld [vmem:[%s3677_s3 + $0x48] sm:$0xff] }
 0x1a2   :  { %2956 = vmatprep.mubr.msk.f32.mxu1 %vm3179_vm1, %v3178_v14 }
 0x1a3   :  { %v2948_v5 = vpop.f32.mrf.mxu0 }
 0x1a4   :  { %v745_v8 = vadd.f32 %v2948_v5, %v2677_v4 }
 0x1a5   :  { %v739_v17 = vpop.f32.mrf.mxu0 }
 0x1a6   :  { %v740_v18 = vadd.f32 %v2677_v4, %v739_v17 }
 0x1a8   :  { %2955 = vmatpush3.msra.mxu1 %v740_v18 }
 0x1a9   :  { %2964 = vmatprep.subr.mxu1 %v3178_v14 }
 0x21e   :  { %v384_v58 = vpop.xlane.xlu1 %383 }
 0x21f   :  { %v385_v59 = vsub.f32 %v378_v43, %v384_v58  ;;  %v2691_v43 = vld [vmem:[%s3675_s1 + $0x58] sm:$0xff]  ;;  %v2704_v58 = vld [vmem:[%s3677_s3 + $0x40] sm:$0xff] }
 0x221   :  { %v386_v60 = vmul.f32 1.442695, %v385_v59 }
 0x222   :  { %v473_v2 = vpop.xlane.xlu1 %472 }
 0x223   :  { %3120 = vpow2.f32 %v386_v60  ;;  %v474_v24 = vsub.f32 %v3377_v42, %v473_v2  ;;  %v2698_v42 = vld [vmem:[%s3676_s2 + $0x50] sm:$0xff] }
 0x225   :  { %v475_v25 = vmul.f32 1.442695, %v474_v24 }
 0x230   :  { %v3121_v61 = vpop.eup %3120 }
 0x231   :  { %v388_v62 = vsel %vm305_vm2, %v3121_v61, 0.0 }
 0x232   :  { %389 = vadd.xlane.f32.xlu1 %v388_v62 }
 0x261   :  { %v820_v63 = vpop.f32.mrf.mxu1 }
 0x262   :  { %v824_v0 = vsel %vm305_vm2, %v820_v63, -inf }
 0x263   :  { %825 = vmax.xlane.f32.xlu0 %v824_v0  ;;  %v2953_v1 = vpop.f32.mrf.mxu1 }
 0x264   :  { %v2693_v1 = vld [vmem:[%s3678_s4 + $0x2] ss:$0 sm:$0xff] }
 0x2bb   :  { %v390_v3 = vpop.xlane.xlu1 %389 }
 0x2bc   :  { %3122 = vrcp.f32 %v390_v3 }
 0x2c9   :  { %v3123_v6 = vpop.eup %3122 }
 0x2ca   :  { %v3398_v10 = vmul.f32 %v3123_v6, %v3121_v61  ;;  %v2709_v6 = vld [vmem:[%s3680_s6 + $0x2] ss:$0 sm:$0xff] }
 0x2cc   :  { %2962 = vmatmul.mubr.msk.f32.vlgmr.msra.gmra.mxu0 %vm305_vm2, %v3398_v10 }
 0x2cd   :  { %2970 = vmatpush3.msra.mxu0 %v745_v8  ;;  %2971 = vmatprep.mubr.msk.f32.mxu0 %vm3179_vm1, %v3178_v14 }
 0x2ce   :  { %2979 = vmatprep.subr.mxu0 %v2691_v43 }
 0x2ec   :  { %v826_v11 = vpop.xlane.xlu0 %825 }
 0x2ed   :  { %v827_v12 = vsub.f32 %v820_v63, %v826_v11 }
 0x2ef   :  { %v828_v13 = vmul.f32 1.442695, %v827_v12 }
 0x2f1   :  { %3124 = vpow2.f32 %v828_v13 }
 0x2fe   :  { %v3125_v15 = vpop.eup %3124 }
 0x2ff   :  { %v830_v16 = vsel %vm305_vm2, %v3125_v15, 0.0 }
 0x300   :  { %831 = vadd.xlane.f32.xlu0 %v830_v16 }
 0x389   :  { %v832_v19 = vpop.xlane.xlu0 %831 }
 0x38a   :  { %3126 = vrcp.f32 %v832_v19 }
 0x38b   :  { %3128 = vpow2.f32 %v475_v25 }
 0x38c   :  { %v3406_v20 = vpop.f32.mrf.mxu0 }
 0x38e   :  { %v2963_v21 = vpop.f32.mrf.mxu0 }
 0x397   :  { %v3127_v22 = vpop.eup %3126 }
 0x398   :  { %v3408_v23 = vmul.f32 %v3127_v22, %v3125_v15  ;;  %v3129_v30 = vpop.eup %3128 }
 0x399   :  { %v477_v32 = vsel %vm305_vm2, %v3129_v30, 0.0 }
 0x39a   :  { %2957 = vmatmul.mubr.msk.f32.vlgmr.msra.gmra.mxu1 %vm305_vm2, %v3408_v23 }
 0x39b   :  { %2965 = vmatpush3.xpose.msk.msra.mxu1 %vm305_vm2, %v657_v51  ;;  %2966 = vmatprep.mubr.msk.f32.mxu1 %vm3179_vm1, %v3178_v14  ;;  %v2688_v51 = vld [vmem:[%s3675_s1 + $0x40] sm:$0xff] }
 0x39c   :  { %2974 = vmatprep.subr.mxu1 %v3178_v14 }
 0x39e   :  { %2967 = vmatmul.mubr.msk.f32.vlgmr.msra.gmra.mxu1 %vm305_vm2, %v569_v54 }
 0x39f   :  { %2975 = vmatpush3.msra.mxu1 %v3366_v38  ;;  %2976 = vmatprep.mubr.msk.f32.mxu1 %vm3179_vm1, %v3178_v14 }
 0x3a0   :  { %2990 = vmatprep.subr.mxu1 %v2699_v41 }
 0x45a   :  { %v3421_v26 = vpop.f32.mrf.mxu1 }
 0x45c   :  { %v2958_v27 = vpop.f32.mrf.mxu1 }
 0x45e   :  { %v1056_v28 = vpop.f32.mrf.mxu1 }
 0x45f   :  { %v1060_v29 = vsel %vm305_vm2, %v1056_v28, -inf }
 0x460   :  { %1061 = vmax.xlane.f32.xlu0 %v1060_v29  ;;  %v2968_v31 = vpop.f32.mrf.mxu1 }
 0x464   :  { %478 = vadd.xlane.f32.xlu0 %v477_v32 }
 0x4e9   :  { %v1062_v33 = vpop.xlane.xlu0 %1061 }
 0x4ea   :  { %v1063_v34 = vsub.f32 %v1056_v28, %v1062_v33 }
 0x4ec   :  { %v1064_v35 = vmul.f32 1.442695, %v1063_v34  ;;  %v2721_v34 = vld [vmem:[%s3675_s1 + $0x78] sm:$0xff] }
 0x4ed   :  { %v479_v36 = vpop.xlane.xlu0 %478 }
 0x4ee   :  { %3130 = vpow2.f32 %v1064_v35  ;;  %v2720_v35 = vld [vmem:[%s3675_s1 + $0x70] sm:$0xff] }
 0x4ef   :  { %3132 = vrcp.f32 %v479_v36  ;;  %v2719_v36 = vld [vmem:[%s3675_s1 + $0x68] sm:$0xff] }
 0x4fb   :  { %v3131_v37 = vpop.eup %3130 }
 0x4fc   :  { %v3133_v38 = vpop.eup %3132  ;;  %v1066_v39 = vsel %vm305_vm2, %v3131_v37, 0.0 }
 0x4fd   :  { %1067 = vadd.xlane.f32.xlu1 %v1066_v39  ;;  %v3426_v40 = vmul.f32 %v3133_v38, %v3129_v30 }
 0x4ff   :  { %2977 = vmatmul.mubr.msk.f32.vlgmr.msra.gmra.mxu1 %vm305_vm2, %v3426_v40 }
 0x500   :  { %2998 = vmatprep.mubr.msk.f32.mxu1 %vm51_vm0, %v3267_v7  ;;  %2991 = vmatpush3.msra.mxu1 %v2699_v41 }
 0x501   :  { %2992 = vmatprep.subr.mxu1 %v2698_v42 }
 0x502   :  { %2993 = vmatpush3.msra.mxu1 %v2698_v42 }
 0x503   :  { %2994 = vmatprep.subr.mxu1 %v2697_v44 }
 0x504   :  { %2995 = vmatpush3.msra.mxu1 %v2697_v44 }
 0x505   :  { %2996 = vmatprep.subr.mxu1 %v2696_v45 }
 0x506   :  { %2997 = vmatpush3.msra.mxu1 %v2696_v45  ;;  %v835_v45 = vadd.f32 %v3408_v23, %v3398_v10  ;;  %v2728_v10 = vld [vmem:[%s3676_s2 + $0x70] sm:$0xff]  ;;  %v2727_v23 = vld [vmem:[%s3676_s2 + $0x68] sm:$0xff] }
 0x507   :  { %2999 = vmatmul.mubr.msk.f32.vlgmr.msra.gmra.mxu1 %vm51_vm0, %v3275_v9  ;;  %3012 = vmatprep.subr.mxu1 %v3178_v14 }
 0x508   :  { %3014 = vmatprep.mubr.msk.f32.mxu1 %vm3179_vm1, %v3178_v14 }
 0x586   :  { %v1068_v46 = vpop.xlane.xlu1 %1067 }
 0x587   :  { %3134 = vrcp.f32 %v1068_v46 }
 0x594   :  { %v3135_v47 = vpop.eup %3134 }
 0x595   :  { %v3452_v48 = vmul.f32 %v3135_v47, %v3131_v37  ;;  %v2718_v37 = vld [vmem:[%s3675_s1 + $0x60] sm:$0xff] }
 0x597   :  { %2972 = vmatmul.mubr.msk.f32.vlgmr.msra.gmra.mxu0 %vm305_vm2, %v3452_v48  ;;  %v1071_v42 = vadd.f32 %v3452_v48, %v3426_v40  ;;  %v2726_v40 = vld [vmem:[%s3676_s2 + $0x60] sm:$0xff]  ;;  %v2736_v48 = vld [vmem:[%s3677_s3 + $0x70] sm:$0xff] }
 0x598   :  { %2980 = vmatpush3.msra.mxu0 %v2691_v43  ;;  %2987 = vmatprep.mubr.msk.f32.mxu0 %vm51_vm0, %v3267_v7 }
 0x599   :  { %2981 = vmatprep.subr.mxu0 %v2690_v49 }
 0x59a   :  { %2982 = vmatpush3.msra.mxu0 %v2690_v49  ;;  %v2729_v49 = vld [vmem:[%s3676_s2 + $0x78] sm:$0xff] }
 0x59b   :  { %2983 = vmatprep.subr.mxu0 %v2689_v50 }
 0x59c   :  { %2984 = vmatpush3.msra.mxu0 %v2689_v50 }
 0x59d   :  { %2985 = vmatprep.subr.mxu0 %v2688_v51 }
 0x59e   :  { %2986 = vmatpush3.msra.mxu0 %v2688_v51  ;;  %v2735_v51 = vld [vmem:[%s3677_s3 + $0x68] sm:$0xff] }
 0x59f   :  { %2988 = vmatmul.mubr.msk.f32.vlgmr.msra.gmra.mxu0 %vm51_vm0, %v3275_v9  ;;  %3001 = vmatprep.subr.mxu0 %v2707_v52 }
 0x5a0   :  { %3002 = vmatpush3.msra.mxu0 %v2707_v52  ;;  %3009 = vmatprep.mubr.msk.f32.mxu0 %vm51_vm0, %v3267_v7  ;;  %v2734_v52 = vld [vmem:[%s3677_s3 + $0x60] sm:$0xff] }
 0x5a1   :  { %3003 = vmatprep.subr.mxu0 %v2706_v55 }
 0x5a2   :  { %3004 = vmatpush3.msra.mxu0 %v2706_v55 }
 0x5a3   :  { %3005 = vmatprep.subr.mxu0 %v2705_v57 }
 0x5a4   :  { %3006 = vmatpush3.msra.mxu0 %v2705_v57 }
 0x5a5   :  { %3007 = vmatprep.subr.mxu0 %v2704_v58 }
 0x5a6   :  { %3008 = vmatpush3.msra.mxu0 %v2704_v58 }
 0x5a7   :  { %3010 = vmatmul.mubr.msk.f32.vlgmr.msra.gmra.mxu0 %vm51_vm0, %v3275_v9  ;;  %3022 = vmatprep.subr.mxu0 %v3178_v14 }
 0x5a8   :  { %3024 = vmatprep.mubr.msk.f32.mxu0 %vm3179_vm1, %v3178_v14 }
 0x5bf   :  { %v3474_v53 = vpop.f32.mrf.mxu1 }
 0x5c1   :  { %v2978_v54 = vpop.f32.mrf.mxu1 }
 0x5c2   :  { %v981_v54 = vadd.f32 %v3406_v20, %v3421_v26  ;;  %v2723_v20 = vld [vmem:[%s3678_s4 + $0x3] ss:$0 sm:$0xff] }
 0x5c7   :  { %v3000_v59 = vpop.f32.mrf.mxu1 }
 0x5c8   :  { %v1393_v60 = vadd.f32 %v3000_v59, %v2701_v56 }
 0x5c9   :  { %v1387_v61 = vpop.f32.mrf.mxu1 }
 0x5ca   :  { %v1388_v62 = vadd.f32 %v2701_v56, %v1387_v61  ;;  %3023 = vmatpush3.xpose.msk.msra.mxu0 %vm305_vm2, %v1393_v60 }
 0x5cb   :  { %3032 = vmatprep.subr.mxu0 %v2721_v34 }
 0x5cc   :  { %3013 = vmatpush3.xpose.msk.msra.mxu1 %vm305_vm2, %v1388_v62 }
 0x5cd   :  { %3017 = vmatprep.subr.mxu1 %v3178_v14 }
 0x657   :  { %v3496_v63 = vpop.f32.mrf.mxu0 }
 0x658   :  { %v1217_v58 = vadd.f32 %v3474_v53, %v3496_v63 }
 0x659   :  { %v2973_v0 = vpop.f32.mrf.mxu0 }
 0x65f   :  { %v2989_v2 = vpop.f32.mrf.mxu0 }
 0x660   :  { %v1305_v3 = vadd.f32 %v2989_v2, %v2693_v1 }
 0x661   :  { %v1299_v4 = vpop.f32.mrf.mxu0 }
 0x662   :  { %v1300_v5 = vadd.f32 %v2693_v1, %v1299_v4  ;;  %3025 = vmatmul.mubr.msk.f32.vlgmr.msra.gmra.mxu0 %vm305_vm2, %v1305_v3  ;;  %v2739_v4 = vld [vmem:[%s3680_s6 + $0x3] ss:$0 sm:$0xff] }
 0x663   :  { %3040 = vmatprep.mubr.msk.f32.mxu0 %vm51_vm0, %v3267_v7  ;;  %3033 = vmatpush3.msra.mxu0 %v2721_v34 }
 0x664   :  { %3015 = vmatmul.mubr.msk.f32.vlgmr.msra.gmra.mxu1 %vm305_vm2, %v1300_v5  ;;  %3034 = vmatprep.subr.mxu0 %v2720_v35 }
 0x665   :  { %3019 = vmatprep.mubr.msk.f32.mxu1 %vm3179_vm1, %v3178_v14  ;;  %3035 = vmatpush3.msra.mxu0 %v2720_v35 }
 0x666   :  { %3036 = vmatprep.subr.mxu0 %v2719_v36 }
 0x667   :  { %v3011_v8 = vpop.f32.mrf.mxu0  ;;  %3037 = vmatpush3.msra.mxu0 %v2719_v36 }
 0x668   :  { %v1481_v11 = vadd.f32 %v3011_v8, %v2709_v6  ;;  %3038 = vmatprep.subr.mxu0 %v2718_v37 }
 0x669   :  { %v1475_v12 = vpop.f32.mrf.mxu0  ;;  %3039 = vmatpush3.msra.mxu0 %v2718_v37 }
 0x66a   :  { %v1476_v13 = vadd.f32 %v2709_v6, %v1475_v12  ;;  %3041 = vmatmul.mubr.msk.f32.vlgmr.msra.gmra.mxu0 %vm51_vm0, %v3275_v9 }
 0x66b   :  { %3062 = vmatprep.mubr.msk.f32.mxu0 %vm51_vm0, %v3267_v7 }
 0x66c   :  { %3018 = vmatpush3.msra.mxu1 %v1476_v13 }
 0x66d   :  { %3027 = vmatprep.subr.mxu1 %v3178_v14 }
 0x722   :  { %v1720_v15 = vpop.f32.mrf.mxu0 }
 0x723   :  { %v1724_v16 = vsel %vm305_vm2, %v1720_v15, -inf }
 0x724   :  { %1725 = vmax.xlane.f32.xlu1 %v1724_v16  ;;  %v1556_v17 = vpop.f32.mrf.mxu1  ;;  %v3026_v18 = vpop.f32.mrf.mxu0 }
 0x725   :  { %v1560_v19 = vsel %vm305_vm2, %v1556_v17, -inf }
 0x726   :  { %1561 = vmax.xlane.f32.xlu0 %v1560_v19  ;;  %v3016_v21 = vpop.f32.mrf.mxu1 }
 0x72a   :  { %v3042_v62 = vpop.f32.mrf.mxu0 }
 0x72b   :  { %v1897_v1 = vadd.f32 %v3042_v62, %v2723_v20 }
 0x72c   :  { %v1891_v53 = vpop.f32.mrf.mxu0 }
 0x72d   :  { %v1892_v63 = vadd.f32 %v2723_v20, %v1891_v53 }
 0x7ad   :  { %v1726_v22 = vpop.xlane.xlu1 %1725 }
 0x7ae   :  { %v1727_v24 = vsub.f32 %v1720_v15, %v1726_v22 }
 0x7af   :  { %v1562_v25 = vpop.xlane.xlu0 %1561 }
 0x7b0   :  { %v1728_v27 = vmul.f32 1.442695, %v1727_v24  ;;  %v1563_v28 = vsub.f32 %v1556_v17, %v1562_v25 }
 0x7b2   :  { %3136 = vpow2.f32 %v1728_v27  ;;  %v1564_v29 = vmul.f32 1.442695, %v1563_v28 }
 0x7b4   :  { %3138 = vpow2.f32 %v1564_v29 }
 0x7bf   :  { %v3137_v30 = vpop.eup %3136 }
 0x7c0   :  { %v1730_v31 = vsel %vm305_vm2, %v3137_v30, 0.0 }
 0x7c1   :  { %v3139_v32 = vpop.eup %3138  ;;  %1731 = vadd.xlane.f32.xlu1 %v1730_v31 }
 0x7c2   :  { %v1566_v33 = vsel %vm305_vm2, %v3139_v32, 0.0 }
 0x7c3   :  { %1567 = vadd.xlane.f32.xlu0 %v1566_v33 }
 0x84a   :  { %v1732_v38 = vpop.xlane.xlu1 %1731 }
 0x84b   :  { %3140 = vrcp.f32 %v1732_v38 }
 0x84c   :  { %v1568_v39 = vpop.xlane.xlu0 %1567 }
 0x84d   :  { %3142 = vrcp.f32 %v1568_v39 }
 0x858   :  { %v3141_v41 = vpop.eup %3140 }
 0x859   :  { %v1734_v43 = vmul.f32 %v3141_v41, %v3137_v30 }
 0x85a   :  { %v3143_v44 = vpop.eup %3142 }
 0x85b   :  { %v1570_v46 = vmul.f32 %v3143_v44, %v3139_v32  ;;  %v3535_v47 = vadd.f32 %v1734_v43, %v1071_v42  ;;  %v2415_v44 = vld [vmem:[%s3682_s8 + $0x10] sm:$0xff] }
 0x85d   :  { %3020 = vmatmul.mubr.msk.f32.vlgmr.msra.gmra.mxu1 %vm305_vm2, %v1570_v46  ;;  %v3541_v50 = vadd.f32 %v1570_v46, %v835_v45  ;;  %v2413_v45 = vld [vmem:[%s3682_s8] sm:$0xff]  ;;  %v2507_v46 = vld [vmem:[%s3683_s9 + $0x38] sm:$0xff] }
 0x85e   :  { %3028 = vmatpush3.msra.mxu1 %v1481_v11  ;;  %3029 = vmatprep.mubr.msk.f32.mxu1 %vm3179_vm1, %v3178_v14 }
 0x85f   :  { %3043 = vmatprep.subr.mxu1 %v2729_v49 }
 0x861   :  { %3030 = vmatmul.mubr.msk.f32.vlgmr.msra.gmra.mxu1 %vm305_vm2, %v1734_v43  ;;  %v2416_v43 = vld [vmem:[%s3682_s8 + $0x18] sm:$0xff] }
 0x862   :  { %3044 = vmatpush3.msra.mxu1 %v2729_v49  ;;  %3051 = vmatprep.mubr.msk.f32.mxu1 %vm51_vm0, %v3267_v7  ;;  %v2737_v7 = vld [vmem:[%s3677_s3 + $0x78] sm:$0xff]  ;;  %v2505_v49 = vld [vmem:[%s3683_s9 + $0x28] sm:$0xff] }
 0x863   :  { %3045 = vmatprep.subr.mxu1 %v2728_v10  ;;  %3054 = vmatprep.subr.mxu0 %v2737_v7 }
 0x864   :  { %3046 = vmatpush3.msra.mxu1 %v2728_v10  ;;  %3055 = vmatpush3.msra.mxu0 %v2737_v7  ;;  %v2503_v10 = vld [vmem:[%s3683_s9 + $0x18] sm:$0xff] }
 0x865   :  { %3047 = vmatprep.subr.mxu1 %v2727_v23  ;;  %3056 = vmatprep.subr.mxu0 %v2736_v48 }
 0x866   :  { %3048 = vmatpush3.msra.mxu1 %v2727_v23  ;;  %3057 = vmatpush3.msra.mxu0 %v2736_v48 }
 0x867   :  { %3049 = vmatprep.subr.mxu1 %v2726_v40  ;;  %3058 = vmatprep.subr.mxu0 %v2735_v51 }
 0x868   :  { %3050 = vmatpush3.msra.mxu1 %v2726_v40  ;;  %3059 = vmatpush3.msra.mxu0 %v2735_v51  ;;  %v2748_v40 = vld [vmem:[%s3681_s7] ss:$0 sm:$0xff] }
 0x869   :  { %3052 = vmatmul.mubr.msk.f32.vlgmr.msra.gmra.mxu1 %vm51_vm0, %v3275_v9  ;;  %3065 = vmatprep.subr.mxu1 %v3178_v14 }
 0x86a   :  { %3067 = vmatprep.mubr.msk.f32.mxu1 %vm3179_vm1, %v3178_v14  ;;  %3060 = vmatprep.subr.mxu0 %v2734_v52 }
 0x86b   :  { %3061 = vmatpush3.msra.mxu0 %v2734_v52 }
 0x86c   :  { %3063 = vmatmul.mubr.msk.f32.vlgmr.msra.gmra.mxu0 %vm51_vm0, %v3275_v9  ;;  %3075 = vmatprep.subr.mxu0 %v3178_v14  ;;  %v2731_v9 = vld [vmem:[%s3679_s5 + $0x3] ss:$0 sm:$0xff] }
 0x86d   :  { %3077 = vmatprep.mubr.msk.f32.mxu0 %vm3179_vm1, %v3178_v14 }
 0x91d   :  { %v1643_v55 = vpop.f32.mrf.mxu1 }
 0x91e   :  { %v3581_v56 = vadd.f32 %v1643_v55, %v981_v54 }
 0x91f   :  { %v3021_v57 = vpop.f32.mrf.mxu1 }
 0x921   :  { %v1807_v59 = vpop.f32.mrf.mxu1 }
 0x922   :  { %v3585_v60 = vadd.f32 %v1807_v59, %v1217_v58  ;;  %v2502_v58 = vld [vmem:[%s3683_s9 + $0x10] sm:$0xff]  ;;  %v2500_v59 = vld [vmem:[%s3683_s9] sm:$0xff] }
 0x923   :  { %v3031_v61 = vpop.f32.mrf.mxu1 }
 0x929   :  { %v3053_v26 = vpop.f32.mrf.mxu1 }
 0x92a   :  { %v1985_v0 = vadd.f32 %v3053_v26, %v2731_v9 }
 0x92b   :  { %v1979_v2 = vpop.f32.mrf.mxu1 }
 0x92c   :  { %v1980_v3 = vadd.f32 %v2731_v9, %v1979_v2  ;;  %3076 = vmatpush3.xpose.msk.msra.mxu0 %vm305_vm2, %v1985_v0  ;;  %v3064_v5 = vpop.f32.mrf.mxu0 }
 0x92d   :  { %v2073_v6 = vadd.f32 %v3064_v5, %v2739_v4  ;;  %3085 = vmatprep.subr.mxu0 %v2416_v43 }
 0x92e   :  { %3066 = vmatpush3.xpose.msk.msra.mxu1 %vm305_vm2, %v1980_v3  ;;  %v2067_v8 = vpop.f32.mrf.mxu0 }
 0x92f   :  { %3078 = vmatmul.mubr.msk.f32.vlgmr.msra.gmra.mxu0 %vm305_vm2, %v1897_v1  ;;  %3070 = vmatprep.subr.mxu1 %v3178_v14  ;;  %v2068_v11 = vadd.f32 %v2739_v4, %v2067_v8 }
 0x930   :  { %3086 = vmatpush3.msra.mxu0 %v2416_v43 }
 0x931   :  { %3068 = vmatmul.mubr.msk.f32.vlgmr.msra.gmra.mxu1 %vm305_vm2, %v1892_v63  ;;  %3087 = vmatprep.subr.mxu0 %v2415_v44 }
 0x932   :  { %3072 = vmatprep.mubr.msk.f32.mxu1 %vm3179_vm1, %v3178_v14  ;;  %3071 = vmatpush3.msra.mxu1 %v2068_v11 }
 0x933   :  { %3080 = vmatprep.subr.mxu1 %v3178_v14  ;;  %3088 = vmatpush3.msra.mxu0 %v2415_v44 }
 0x9ef   :  { %v2312_v12 = vpop.f32.mrf.mxu0 }
 0x9f0   :  { %v2316_v13 = vsel %vm305_vm2, %v2312_v12, -inf }
 0x9f1   :  { %2317 = vmax.xlane.f32.xlu1 %v2316_v13  ;;  %v2148_v15 = vpop.f32.mrf.mxu1  ;;  %v3079_v16 = vpop.f32.mrf.mxu0 }
 0x9f2   :  { %v2152_v17 = vsel %vm305_vm2, %v2148_v15, -inf }
 0x9f3   :  { %2153 = vmax.xlane.f32.xlu0 %v2152_v17  ;;  %v3069_v18 = vpop.f32.mrf.mxu1 }
 0xa7a   :  { %v2318_v19 = vpop.xlane.xlu1 %2317 }
 0xa7b   :  { %v2319_v21 = vsub.f32 %v2312_v12, %v2318_v19 }
 0xa7c   :  { %v2154_v22 = vpop.xlane.xlu0 %2153 }
 0xa7d   :  { %v2320_v24 = vmul.f32 1.442695, %v2319_v21  ;;  %v2155_v25 = vsub.f32 %v2148_v15, %v2154_v22 }
 0xa7f   :  { %3144 = vpow2.f32 %v2320_v24  ;;  %v2156_v27 = vmul.f32 1.442695, %v2155_v25 }
 0xa81   :  { %3146 = vpow2.f32 %v2156_v27 }
 0xa8c   :  { %v3145_v28 = vpop.eup %3144 }
 0xa8d   :  { %v2322_v29 = vsel %vm305_vm2, %v3145_v28, 0.0 }
 0xa8e   :  { %v3147_v30 = vpop.eup %3146  ;;  %2323 = vadd.xlane.f32.xlu1 %v2322_v29 }
 0xa8f   :  { %v2158_v31 = vsel %vm305_vm2, %v3147_v30, 0.0 }
 0xa90   :  { %2159 = vadd.xlane.f32.xlu0 %v2158_v31 }
 0xb17   :  { %v2324_v32 = vpop.xlane.xlu1 %2323 }
 0xb18   :  { %3148 = vrcp.f32 %v2324_v32 }
 0xb19   :  { %v2160_v33 = vpop.xlane.xlu0 %2159 }
 0xb1a   :  { %3150 = vrcp.f32 %v2160_v33 }
 0xb25   :  { %v3149_v34 = vpop.eup %3148 }
 0xb26   :  { %v2326_v35 = vmul.f32 %v3149_v34, %v3145_v28 }
 0xb27   :  { %v3151_v36 = vpop.eup %3150 }
 0xb28   :  { %v2162_v37 = vmul.f32 %v3151_v36, %v3147_v30  ;;  %v2327_v38 = vadd.f32 %v2326_v35, %v3535_v47  ;;  %v2506_v47 = vld [vmem:[%s3683_s9 + $0x30] sm:$0xff] }
 0xb2a   :  { %3073 = vmatmul.mubr.msk.f32.vlgmr.msra.gmra.mxu1 %vm305_vm2, %v2162_v37  ;;  %v2163_v39 = vadd.f32 %v2162_v37, %v3541_v50  ;;  %v2620_v41 = vmul.f32 0.25, %v2327_v38  ;;  %v2504_v50 = vld [vmem:[%s3683_s9 + $0x20] sm:$0xff] }
 0xb2b   :  { %3081 = vmatpush3.msra.mxu1 %v2073_v6  ;;  %3082 = vmatprep.mubr.msk.f32.mxu1 %vm3179_vm1, %v3178_v14  ;;  %v2414_v14 = vld [vmem:[%s3682_s8 + $0x8] sm:$0xff] }
 0xb2c   :  { %v2619_v42 = vmul.f32 0.25, %v2163_v39  ;;  %2622 = vst.msk [vmem:[#allocation2 + $0x8] sm:$0xff] %vm305_vm2, %v2620_v41  ;;  %3089 = vmatprep.subr.mxu0 %v2414_v14  ;;  %3096 = vmatprep.subr.mxu1 %v2507_v46 }
 0xb2d   :  { %3090 = vmatpush3.msra.mxu0 %v2414_v14 }
 0xb2e   :  { %3083 = vmatmul.mubr.msk.f32.vlgmr.msra.gmra.mxu1 %vm305_vm2, %v2326_v35  ;;  %2621 = vst.msk [vmem:[#allocation2] sm:$0xff] %vm305_vm2, %v2619_v42  ;;  %3091 = vmatprep.subr.mxu0 %v2413_v45 }
 0xb2f   :  { %3092 = vmatpush3.msra.mxu0 %v2413_v45  ;;  %3097 = vmatpush3.msra.mxu1 %v2507_v46 }
 0xb30   :  { %3098 = vmatprep.subr.mxu1 %v2506_v47 }
 0xb31   :  { %3099 = vmatpush3.msra.mxu1 %v2506_v47 }
 0xb32   :  { %3100 = vmatprep.subr.mxu1 %v2505_v49 }
 0xb33   :  { %3101 = vmatpush3.msra.mxu1 %v2505_v49 }
 0xb34   :  { %3102 = vmatprep.subr.mxu1 %v2504_v50 }
 0xb35   :  { %3103 = vmatpush3.msra.mxu1 %v2504_v50 }
 0xb36   :  { %3104 = vmatprep.subr.mxu1 %v2503_v10 }
 0xb37   :  { %3105 = vmatpush3.msra.mxu1 %v2503_v10 }
 0xb38   :  { %3106 = vmatprep.subr.mxu1 %v2502_v58 }
 0xb39   :  { %3107 = vmatpush3.msra.mxu1 %v2502_v58 }
 0xbea   :  { %v2235_v23 = vpop.f32.mrf.mxu1 }
 0xbeb   :  { %v2239_v7 = vadd.f32 %v2235_v23, %v3581_v56  ;;  %v2501_v56 = vld [vmem:[%s3683_s9 + $0x8] sm:$0xff]  ;;  %s3180_s9 = smov [#allocation2]  }
 0xbec   :  { %v3074_v48 = vpop.f32.mrf.mxu1  ;;  %3108 = vmatprep.subr.mxu1 %v2501_v56  ;;  %s2630_s4 = sshll.u32 %s3180_s9, 4  ;;  %s2631_s4 = int_to_ptr.vmem [resolvable:$true] %s2630_s4 }
 0xbed   :  { %v2411_v51 = vadd.f32 %v2748_v40, %v2239_v7  ;;  %3109 = vmatpush3.msra.mxu1 %v2501_v56  ;;  %s3156_s5 = scalar_lea.vmem %s2631_s4, 256  ;;  %p3161_p1 = scmp.lt.s32.totalorder %s2631_s4, %s2631_s4 }
 0xbee   :  { %v2399_v52 = vpop.f32.mrf.mxu1  ;;  %3110 = vmatprep.subr.mxu1 %v2500_v59  ;;  %p3157_p0 = scmp.ne.s32.totalorder %s2631_s4, %s3156_s5  ;;  %p3162_p2 = scmp.lt.s32.totalorder %s3156_s5, %s3156_s5 }
 0xbef   :  { %v2403_v54 = vadd.f32 %v2399_v52, %v3585_v60  ;;  %3093 = vmatprep.mubr.msk.f32.mxu0 %vm51_vm0, %v2411_v51  ;;  %3111 = vmatpush3.msra.mxu1 %v2500_v59 }
 0xbf0   :  { %v3084_v55 = vpop.f32.mrf.mxu1  ;;  %p3163_p3 = por %p3162_p2, %p3161_p1 }
 0xbf1   :  { %v2412_v57 = vadd.f32 %v2748_v40, %v2403_v54 }
 0xbf2   :  { %p3164_p4 = pnand %p3163_p3, %p3157_p0 }
 0xbf3   :  { %3094 = vmatmul.mubr.msk.f32.vlgmr.msra.gmra.mxu0 %vm51_vm0, %v2412_v57 }
 0xcb3   :  { %v3095_v60 = vpop.f32.mrf.mxu0 }
 0xcb4   :  { %v2499_v62 = vmax.f32 %v3095_v60, 0.0 }
 0xcb5   :  { %v2489_v61 = vpop.f32.mrf.mxu0 }
 0xcb6   :  { %v2498_v9 = vmax.f32 %v2489_v61, 0.0 }
 0xcb8   :  { %3112 = vmatprep.mubr.msk.f32.mxu1 %vm2508_vm3, %v2498_v9 }
 0xcb9   :  { %3113 = vmatmul.mubr.msk.f32.vlgmr.msra.gmra.mxu1 %vm2508_vm3, %v2499_v62 }
 0xd79   :  { %v3114_v20 = vpop.f32.mrf.mxu1 }
 0xd7a   :  { %v2587_v26 = vadd.f32 %v3114_v20, %v2412_v57 }
 0xd7b   :  { %v2581_v0 = vpop.f32.mrf.mxu1 }
 0xd7c   :  { %v2582_v1 = vadd.f32 %v2581_v0, %v2411_v51  ;;  %v2593_v2 = vsel %vm51_vm0, %v2587_v26, 0.0 }
 0xd7d   :  { %2594 = vadd.xlane.f32.xlu1 %v2593_v2 }
 0xd7e   :  { %v2590_v3 = vsel %vm51_vm0, %v2582_v1, 0.0 }
 0xd7f   :  { %2591 = vadd.xlane.f32.xlu0 %v2590_v3 }
 0xe06   :  { %v2595_v53 = vpop.xlane.xlu1 %2594 }
 0xe07   :  { %v2598_v63 = vmul.f32 0.03125, %v2595_v53 }
 0xe08   :  { %v2592_v4 = vpop.xlane.xlu0 %2591 }
 0xe09   :  { %v2600_v5 = vsub.f32 %v2587_v26, %v2598_v63  ;;  %v2597_v6 = vmul.f32 0.03125, %v2592_v4 }
 0xe0b   :  { %v2599_v8 = vsub.f32 %v2582_v1, %v2597_v6  ;;  %v2602_v11 = vmul.f32 %v2600_v5, %v2600_v5 }
 0xe0d   :  { %v2606_v12 = vsel %vm51_vm0, %v2602_v11, 0.0  ;;  %v2601_v13 = vmul.f32 %v2599_v8, %v2599_v8 }
 0xe0e   :  { %2607 = vadd.xlane.f32.xlu1 %v2606_v12 }
 0xe0f   :  { %v2603_v15 = vsel %vm51_vm0, %v2601_v13, 0.0 }
 0xe10   :  { %2604 = vadd.xlane.f32.xlu0 %v2603_v15 }
 0xe11   :  { %3167 = shalt.err (!%p3164_p4)
}
 0xe12   :  { %s3181_s6 = smov 128   ;;  %s3182_s17 = smov 8  }
 0xe13   :  { %2636 = dma.vmem_to_hbm [thread:$0]  %s2631_s4, 256, %s3685_s11, [#allocation3], %s3181_s6, %s3181_s6, %s3182_s17  }
 0xe97   :  { %v2608_v16 = vpop.xlane.xlu1 %2607 }
 0xe98   :  { %v2610_v17 = vmul.f32 0.03125, %v2608_v16 }
 0xe99   :  { %v2605_v18 = vpop.xlane.xlu0 %2604 }
 0xe9a   :  { %v2612_v19 = vadd.f32 1e-05, %v2610_v17  ;;  %v2609_v21 = vmul.f32 0.03125, %v2605_v18 }
 0xe9c   :  { %3152 = vrsqrt.f32 %v2612_v19  ;;  %v2611_v22 = vadd.f32 1e-05, %v2609_v21 }
 0xe9e   :  { %3154 = vrsqrt.f32 %v2611_v22 }
 0xea9   :  { %v3153_v24 = vpop.eup %3152 }
 0xeaa   :  { %v2616_v25 = vmul.f32 %v3153_v24, %v2600_v5 }
 0xeab   :  { %v3155_v27 = vpop.eup %3154 }
 0xeac   :  { %2618 = vst.msk [vmem:[%s3684_s10 + $0x8] sm:$0xff] %vm51_vm0, %v2616_v25  ;;  %v2615_v28 = vmul.f32 %v3155_v27, %v2599_v8 }
 0xeae   :  { %2617 = vst.msk [vmem:[%s3684_s10] sm:$0xff] %vm51_vm0, %v2615_v28 }
 0xeaf   :  { %3176 = dma.done.wait [#allocation3], 256  }
 0xeb0   :  { %3177 = vsyncadd [#allocation3], 4294967040 }
 0xeb1   :  { %2642 = vsyncpa [#allocation3], 1 }

</bundles_post_ra>
